<compile_context>
chip_gen: v7x
topology: tpu7x:2x2x1
jax: 0.10.0
libtpu: 0.0.40
codegen_flags: <defaults>
</compile_context>

<pallas_src>
import jax
import jax.numpy as jnp
from jax import lax
from jax.experimental import pallas as pl
from jax.experimental.pallas import tpu as pltpu


# --------------------------------------------------------------------------------------
# Pallas kernel 1: farthest point sampling (one batch element per grid step).
# dists / per-step selection one-hots stay in VMEM; centers produced by one one-hot matmul.
# --------------------------------------------------------------------------------------
def _fps_kernel(starts_ref, xyz_ref, xyz_t_ref, centers_ref, sel_ref, dists_ref):
    b = pl.program_id(0)
    N = xyz_t_ref.shape[2]
    G = centers_ref.shape[1]

    xyz_t = xyz_t_ref[0].astype(jnp.float32)                               # (3, N)
    lane = lax.broadcasted_iota(jnp.int32, (1, N), 1).astype(jnp.float32)  # (1, N)

    start = starts_ref[b].astype(jnp.float32)                              # scalar from SMEM
    sel_ref[pl.ds(0, 1), :] = (lane == start).astype(jnp.float32)          # first selection
    dists_ref[...] = jnp.full((1, N), 1e30, jnp.float32)

    def body(i, carry):
        onehot = sel_ref[pl.ds(i, 1), :]                                    # (1, N) current pick
        center = jnp.sum(xyz_t * onehot, axis=-1, keepdims=True)            # (3, 1)
        d = jnp.sum((xyz_t - center) ** 2, axis=0, keepdims=True)           # (1, N)
        dists = jnp.minimum(dists_ref[...], d)
        dists_ref[...] = dists
        m = jnp.max(dists, axis=-1, keepdims=True)                          # (1, 1)
        nxt = jnp.min(jnp.where(dists == m, lane, jnp.float32(N)),
                      axis=-1, keepdims=True)                               # first arg-max index

        @pl.when(i + 1 < G)
        def _():
            sel_ref[pl.ds(i + 1, 1), :] = (lane == nxt).astype(jnp.float32)

        return carry

    lax.fori_loop(0, G, body, 0)

    # Exact gather of the G selected points via a one-hot matmul (MXU, f32 exact).
    centers_ref[0] = jnp.dot(sel_ref[...], xyz_ref[0].astype(jnp.float32),
                             preferred_element_type=jnp.float32).astype(centers_ref.dtype)


def fps_pallas(xyz, xyz_t, num_groups, key):
    """xyz: (B, N, 3) f32, xyz_t: (B, 3, N) f32 -> centers (B, G, 3), random start per batch."""
    B, N, _ = xyz.shape
    G = num_groups
    starts = jax.random.randint(key, (B,), 0, N, dtype=jnp.int32)

    isz = xyz.dtype.itemsize
    flops = int(B * G * N * 12 + B * G * N * 6)
    bytes_accessed = int(2 * xyz.size * isz + B * G * 3 * 4 + B * 4)

    return pl.pallas_call(
        _fps_kernel,
        out_shape=jax.ShapeDtypeStruct((B, G, 3), xyz.dtype),
        grid_spec=pltpu.PrefetchScalarGridSpec(
            num_scalar_prefetch=1,
            grid=(B,),
            in_specs=[
                pl.BlockSpec((1, N, 3), lambda b, starts: (b, 0, 0)),
                pl.BlockSpec((1, 3, N), lambda b, starts: (b, 0, 0)),
            ],
            out_specs=pl.BlockSpec((1, G, 3), lambda b, starts: (b, 0, 0)),
            scratch_shapes=[
                pltpu.VMEM((G, N), jnp.float32),    # per-step selection one-hots
                pltpu.VMEM((1, N), jnp.float32),    # running min distances
            ],
        ),
        compiler_params=pltpu.CompilerParams(dimension_semantics=("parallel",)),
        cost_estimate=pl.CostEstimate(flops=flops, transcendentals=0,
                                      bytes_accessed=bytes_accessed),
    )(starts, xyz, xyz_t)


# --------------------------------------------------------------------------------------
# Pallas kernel 2: fused kNN grouping (distances + top-K selection + batched gather +
# center subtraction).  One grid step handles tg centers of one batch element vs all N pts.
# --------------------------------------------------------------------------------------
def _knn_group_kernel(centers_ref, centers_c_ref, pn_ref, xyz_t_ref, points_ref, out_ref):
    TG = centers_ref.shape[1]
    _, _, K, C = out_ref.shape
    N = xyz_t_ref.shape[2]

    centers = centers_ref[0].astype(jnp.float32)              # (TG, 3)
    ctile = centers_c_ref[0].astype(jnp.float32)               # (TG, C) xyz in first 3, 0 after
    xyz_t = xyz_t_ref[0].astype(jnp.float32)                   # (3, N)
    pn = pn_ref[0]                                              # (1, N)  |p|^2, hoisted
    pts = points_ref[0]                                         # (N, C)

    # Squared distances center->point: |c|^2 + |p|^2 - 2 c.p  (MXU for the dot).
    cn = jnp.sum(centers * centers, axis=-1, keepdims=True)                # (TG, 1)
    dot = jnp.dot(centers, xyz_t, preferred_element_type=jnp.float32)      # (TG, N)
    d2 = cn + pn - 2.0 * dot

    lane = lax.broadcasted_iota(jnp.int32, (TG, N), 1).astype(jnp.float32)
    big = jnp.float32(1e30)
    nf = jnp.float32(N)

    # Top-K (ascending distance, ties broken by lowest index).  Only a per-point "rank"
    # map is recorded; the gather itself is batched into a single matmul afterwards.
    rank = jnp.zeros((TG, N), jnp.int32)
    for k in range(K):                                          # static unroll
        m = jnp.min(d2, axis=-1, keepdims=True)                 # (TG, 1)
        idx = jnp.min(jnp.where(d2 == m, lane, nf),
                      axis=-1, keepdims=True)                   # first argmin
        mk = lane == idx                                        # exact one-hot mask
        rank = jnp.where(mk, k + 1, rank)                       # point -> neighbour slot k+1
        d2 = jnp.where(mk, big, d2)                             # exclude for next k

    # One-hot selection matrix in g-major row order (row = g*K + k), built with a single
    # compare pass; all reshapes keep the minor (lane) dim unchanged.
    kiota = lax.broadcasted_iota(jnp.int32, (TG, K, N), 1) + 1
    onehot = (jnp.broadcast_to(rank[:, None, :], (TG, K, N)) == kiota)
    onehot = onehot.astype(jnp.float32).reshape(TG * K, N)

    # ONE batched gather matmul (exact: one-hot f32 x f32, f32 accumulation).
    gathered = jnp.dot(onehot, pts.astype(jnp.float32),
                       preferred_element_type=jnp.float32)       # (TG*K, C)
    gathered = gathered.reshape(TG, K, C)

    # Single slab store of the whole tile (xyz channels centered, extras untouched).
    out_ref[0] = (gathered - ctile[:, None, :]).astype(out_ref.dtype)


def _pick_knn_tile(G, K, N, budget_bytes, cap=64):
    """Largest divisor of G (multiple of 8, or G itself) fitting the VMEM budget, capped."""
    cands = [d for d in range(1, G + 1) if G % d == 0 and (d % 8 == 0 or d == G)]
    est = lambda t: (2 * t * K + 8 * t) * N * 4          # onehot + loop temps, f32
    ok = [d for d in cands if d <= cap and est(d) <= budget_bytes]
    return max(ok) if ok else min(cands)


def knn_group_pallas(points, xyz_t, centers, group_size, *, tg=None,
                     vmem_budget_bytes=24 * 1024 * 1024):
    """points: (B,N,C), xyz_t: (B,3,N), centers: (B,G,3) -> grouped (B,G,K,C), xyz centered."""
    B, N, C = points.shape
    G = centers.shape[1]
    K = group_size
    assert C >= 3
    assert N < (1 << 24), "float32 lane iota only represents indices exactly below 2^24"

    if tg is None:
        tg = _pick_knn_tile(G, K, N, vmem_budget_bytes)
    assert G % tg == 0 and (tg % 8 == 0 or tg == G)

    # Hoisted |p|^2 (was recomputed every g-step inside the kernel).
    xyz_t32 = xyz_t.astype(jnp.float32)
    pn = jnp.sum(xyz_t32 * xyz_t32, axis=1, keepdims=True)               # (B, 1, N)

    if C > 3:
        centers_c = jnp.concatenate(
            [centers, jnp.zeros((B, G, C - 3), centers.dtype)], axis=-1)
    else:
        centers_c = centers

    isz = points.dtype.itemsize
    flops = int(B * G * N * (6 + 4 * K) + B * G * K * N * 2 * C)
    bytes_accessed = int(B * (G // tg) * (N * C * isz + 3 * N * 4 + N * 4)
                         + centers.size * centers.dtype.itemsize
                         + centers_c.size * centers_c.dtype.itemsize
                         + B * G * K * C * isz)

    return pl.pallas_call(
        _knn_group_kernel,
        out_shape=jax.ShapeDtypeStruct((B, G, K, C), points.dtype),
        grid=(B, G // tg),
        in_specs=[
            pl.BlockSpec((1, tg, 3), lambda b, g: (b, g, 0)),
            pl.BlockSpec((1, tg, C), lambda b, g: (b, g, 0)),
            pl.BlockSpec((1, 1, N), lambda b, g: (b, 0, 0)),
            pl.BlockSpec((1, 3, N), lambda b, g: (b, 0, 0)),
            pl.BlockSpec((1, N, C), lambda b, g: (b, 0, 0)),
        ],
        out_specs=pl.BlockSpec((1, tg, K, C), lambda b, g: (b, g, 0, 0)),
        compiler_params=pltpu.CompilerParams(
            dimension_semantics=("parallel", "parallel")),
        cost_estimate=pl.CostEstimate(flops=flops, transcendentals=0,
                                      bytes_accessed=bytes_accessed),
    )(centers, centers_c, pn, xyz_t, points)


# --------------------------------------------------------------------------------------
# Pallas kernel 3: MiniPointNet over tm groups per grid step (BN folded, w3 split,
# bf16 weights + bf16 layer-1 operands, f32 MXU accumulation, flattened (tm*K, C) input).
# --------------------------------------------------------------------------------------
def _minipointnet_kernel(x_ref, w1_ref, b1_ref, w2_ref, b2_ref,
                         w3g_ref, w3l_ref, b3_ref, w4_ref, b4_ref, out_ref):
    TMK = x_ref.shape[0]
    TM, D = out_ref.shape
    K = TMK // TM

    # first_conv: Conv1d(C,128,1)+BN (folded) -> ReLU -> Conv1d(128,256,1)
    x = x_ref[...].astype(w1_ref.dtype)                                   # bf16 operand
    h = jnp.dot(x, w1_ref[...], preferred_element_type=jnp.float32) + b1_ref[...]
    h = jnp.maximum(h, 0.0)
    feat = jnp.dot(h.astype(w2_ref.dtype), w2_ref[...],
                   preferred_element_type=jnp.float32) + b2_ref[...]       # (TMK, 256)

    # Per-group global max over the K points.
    gmax = jnp.max(feat.reshape(TM, K, -1), axis=1)                        # (TM, 256)

    # second_conv with w3 split: replaces concat([global, local]) + broadcast.
    gbias = jnp.dot(gmax.astype(w3g_ref.dtype), w3g_ref[...],
                    preferred_element_type=jnp.float32) + b3_ref[...]      # (TM, 512)
    h3 = jnp.dot(feat.astype(w3l_ref.dtype), w3l_ref[...],
                 preferred_element_type=jnp.float32)                       # (TMK, 512)
    h3 = jnp.maximum(h3.reshape(TM, K, -1) + gbias[:, None, :], 0.0)       # (TM, K, 512)

    h4 = jnp.dot(h3.reshape(TMK, -1).astype(w4_ref.dtype), w4_ref[...],
                 preferred_element_type=jnp.float32) + b4_ref[...]         # (TMK, D)
    out_ref[...] = jnp.max(h4.reshape(TM, K, -1), axis=1).astype(out_ref.dtype)


def mini_pointnet_pallas(x, params, *, tm=64):
    """x: (B*G, K, C) float32 -> (B*G, token_dim) float32."""
    BG, K, C = x.shape
    D = params["w4t"].shape[1]

    tm = max(1, min(tm, BG))
    pad = (-BG) % tm
    if pad:
        x = jnp.concatenate([x, jnp.zeros((pad, K, C), x.dtype)], axis=0)
    BGp = BG + pad
    assert tm % 8 == 0 or tm == BGp

    x_flat = x.reshape(BGp * K, C)                                          # free reshape

    names = ["w1t", "b1", "w2t", "b2", "w3g", "w3l", "b3", "w4t", "b4"]
    in_specs = [pl.BlockSpec((tm * K, C), lambda i: (i, 0))]
    args = [x_flat]
    wbytes = 0
    for name in names:
        arr = params[name]
        in_specs.append(pl.BlockSpec(arr.shape, lambda i, _nd=arr.ndim: (0,) * _nd))
        args.append(arr)
        wbytes += int(arr.size) * arr.dtype.itemsize

    flops = int(2 * BGp * (K * (C * 128 + 128 * 256 + 256 * 512 + 512 * D) + 256 * 512))
    bytes_accessed = int(x_flat.size * x_flat.dtype.itemsize
                         + (BGp // tm) * wbytes + BGp * D * 4)

    out = pl.pallas_call(
        _minipointnet_kernel,
        out_shape=jax.ShapeDtypeStruct((BGp, D), jnp.float32),
        grid=(BGp // tm,),
        in_specs=in_specs,
        out_specs=pl.BlockSpec((tm, D), lambda i: (i, 0)),
        compiler_params=pltpu.CompilerParams(dimension_semantics=("parallel",)),
        cost_estimate=pl.CostEstimate(flops=flops, transcendentals=0,
                                      bytes_accessed=bytes_accessed),
    )(*args)
    return out[:BG]


# --------------------------------------------------------------------------------------
# PointcloudGrouping.forward equivalent + (optional) tokenizer on top.
# --------------------------------------------------------------------------------------
def pointcloud_grouping(points, num_groups, group_size, key):
    """points: (B, N, C) -> (grouped (B, G, K, C) with centered xyz, centers (B, G, 3))."""
    xyz = points[..., :3].astype(jnp.float32)
    xyz_t = jnp.swapaxes(xyz, 1, 2)                                         # (B, 3, N)
    centers = fps_pallas(xyz, xyz_t, num_groups, key)
    grouped = knn_group_pallas(points, xyz_t, centers, group_size)
    return grouped, centers


def init_params(key, input_channels, token_dim):
    """Synthetic MiniPointNet params, BN (eval-mode running stats) folded into the convs."""
    ks = jax.random.split(key, 16)
    nrm = lambda k, shape, scale=0.05: jax.random.normal(k, shape, jnp.float32) * scale
    eps = 1e-5

    w1 = nrm(ks[0], (128, input_channels)); b1 = nrm(ks[1], (128,))
    g1 = 1.0 + nrm(ks[2], (128,));          be1 = nrm(ks[3], (128,))
    rm1 = nrm(ks[4], (128,));               rv1 = 1.0 + jnp.abs(nrm(ks[5], (128,)))
    w2 = nrm(ks[6], (256, 128));            b2 = nrm(ks[7], (256,))
    w3 = nrm(ks[8], (512, 512));            b3 = nrm(ks[9], (512,))
    g3 = 1.0 + nrm(ks[10], (512,));         be3 = nrm(ks[11], (512,))
    rm3 = nrm(ks[12], (512,));              rv3 = 1.0 + jnp.abs(nrm(ks[13], (512,)))
    w4 = nrm(ks[14], (token_dim, 512));     b4 = nrm(ks[15], (token_dim,))

    # Fold BN into conv weights:  (x@Wt + b)*s + t  ==  x@(Wt*s) + (b*s + t)
    s1 = g1 / jnp.sqrt(rv1 + eps); t1 = be1 - rm1 * s1
    s3 = g3 / jnp.sqrt(rv3 + eps); t3 = be3 - rm3 * s3
    w1t = w1.T * s1[None, :]; b1f = b1 * s1 + t1
    w3t = w3.T * s3[None, :]; b3f = b3 * s3 + t3

    bf16 = jnp.bfloat16
    return dict(
        w1t=w1t.astype(bf16), b1=b1f[None, :],
        w2t=w2.T.astype(bf16), b2=b2[None, :],
        w3g=w3t[:256].astype(bf16),      # multiplies the broadcast global feature
        w3l=w3t[256:].astype(bf16),      # multiplies the per-point local feature
        b3=b3f[None, :],
        w4t=w4.T.astype(bf16), b4=b4[None, :],
    )


def pointcloud_tokenizer(points, params, num_groups, group_size, key):
    grouped, centers = pointcloud_grouping(points, num_groups, group_size, key)
    B, G, K, C = grouped.shape
    tokens = mini_pointnet_pallas(grouped.reshape(B * G, K, C), params)
    return tokens.reshape(B, G, -1), centers, grouped


if __name__ == "__main__":
    key = jax.random.PRNGKey(0)
    k_pts, k_fps, k_par = jax.random.split(key, 3)

    B, N, C = 2, 64, 4          # batch, points, input channels
    G, K, D = 8, 16, 32         # num_groups, group_size, token_dim

    points = jax.random.normal(k_pts, (B, N, C), jnp.float32)

    # Spec module: PointcloudGrouping.forward (whole pipeline jitted per review).
    grouping = jax.jit(pointcloud_grouping, static_argnames=("num_groups", "group_size"))
    grouped, centers = grouping(points, num_groups=G, group_size=K, key=k_fps)
    jax.block_until_ready((grouped, centers))

    assert grouped.shape == (B, G, K, C)
    assert centers.shape == (B, G, 3)
    assert bool(jnp.all(jnp.isfinite(grouped)))
    assert bool(jnp.all(jnp.isfinite(centers)))
    # Nearest neighbour of each center is the center itself -> centered xyz of slot 0 ~ 0.
    assert float(jnp.max(jnp.abs(grouped[:, :, 0, :3]))) < 1e-3

    # Downstream tokenizer (optional), re-tuned per feedback.
    params = init_params(k_par, C, D)
    tokens = mini_pointnet_pallas(grouped.reshape(B * G, K, C), params).reshape(B, G, D)
    jax.block_until_ready(tokens)
    assert tokens.shape == (B, G, D)
    assert bool(jnp.all(jnp.isfinite(tokens)))

    print("KERNEL_OK")
</pallas_src>

<mosaic_0001>
module attributes {stable_mosaic.version = 11 : i64} {
  func.func @_fps_kernel(%arg0: i32, %arg1: memref<2xi32, #tpu.memory_space<smem>>, %arg2: memref<1x64x3xf32, #tpu.memory_space<vmem>>, %arg3: memref<1x3x64xf32, #tpu.memory_space<vmem>>, %arg4: memref<1x8x3xf32, #tpu.memory_space<vmem>>, %arg5: memref<8x64xf32, #tpu.memory_space<vmem>>, %arg6: memref<1x64xf32, #tpu.memory_space<vmem>>) attributes {dimension_semantics = [#tpu.dimension_semantics<parallel>], iteration_bounds = array<i64: 2>, scalar_prefetch = 1 : i64, scratch_operands = 2 : i64, tpu.core_type = #tpu.core_type<tc>, window_params = [{transform_indices = @transform_0, window_bounds = array<i64: 1, 64, 3>}, {transform_indices = @transform_1, window_bounds = array<i64: 1, 3, 64>}, {transform_indices = @transform_2, window_bounds = array<i64: 1, 8, 3>}]} {
    %c0 = arith.constant 0 : index
    %c0_0 = arith.constant 0 : index
    %c0_1 = arith.constant 0 : index
    %0 = vector.load %arg3[%c0, %c0_0, %c0_1] : memref<1x3x64xf32, #tpu.memory_space<vmem>>, vector<1x3x64xf32>
    %1 = vector.shape_cast %0 : vector<1x3x64xf32> to vector<3x64xf32>
    %2 = tpu.iota {dimensions = array<i32: 1>} : vector<1x64xi32>
    %3 = arith.sitofp %2 : vector<1x64xi32> to vector<1x64xf32>
    %4 = arith.index_cast %arg0 : i32 to index
    %5 = memref.load %arg1[%4] : memref<2xi32, #tpu.memory_space<smem>>
    %6 = arith.sitofp %5 : i32 to f32
    %7 = vector.broadcast %6 : f32 to vector<1x64xf32>
    %8 = arith.cmpf oeq, %3, %7 : vector<1x64xf32>
    %9 = arith.extui %8 : vector<1x64xi1> to vector<1x64xi32>
    %10 = arith.sitofp %9 : vector<1x64xi32> to vector<1x64xf32>
    %c0_2 = arith.constant 0 : index
    %c0_3 = arith.constant 0 : index
    %11 = vector.load %arg5[%c0_2, %c0_3] : memref<8x64xf32, #tpu.memory_space<vmem>>, vector<1x64xf32>
    tpu.vector_store %arg5[%c0_2, %c0_3], %10 {strides = array<i32>} : memref<8x64xf32, #tpu.memory_space<vmem>>, vector<1x64xf32>,
    %cst = arith.constant 1.000000e+30 : f32
    %12 = vector.broadcast %cst : f32 to vector<1x64xf32>
    %c0_4 = arith.constant 0 : index
    %c0_5 = arith.constant 0 : index
    %13 = vector.load %arg6[%c0_4, %c0_5] : memref<1x64xf32, #tpu.memory_space<vmem>>, vector<1x64xf32>
    tpu.vector_store %arg6[%c0_4, %c0_5], %12 {strides = array<i32>} : memref<1x64xf32, #tpu.memory_space<vmem>>, vector<1x64xf32>,
    %c0_i32 = arith.constant 0 : i32
    %c8_i32 = arith.constant 8 : i32
    %14 = arith.addi %c0_i32, %c8_i32 : i32
    %c1_i32 = arith.constant 1 : i32
    scf.for %arg7 = %c0_i32 to %14 step %c1_i32  : i32 {
      %22 = arith.index_cast %arg7 : i32 to index
      %c0_16 = arith.constant 0 : index
      %23 = vector.load %arg5[%22, %c0_16] : memref<8x64xf32, #tpu.memory_space<vmem>>, vector<1x64xf32>
      %24 = vector.broadcast %23 : vector<1x64xf32> to vector<3x64xf32>
      %25 = arith.mulf %1, %24 : vector<3x64xf32>
      %cst_17 = arith.constant dense<0.000000e+00> : vector<3xf32>
      %26 = vector.multi_reduction <add>, %25, %cst_17 [1] : vector<3x64xf32> to vector<3xf32>
      %27 = vector.shape_cast %26 : vector<3xf32> to vector<3x1xf32>
      %28 = vector.broadcast %27 : vector<3x1xf32> to vector<3x64xf32>
      %29 = arith.subf %1, %28 : vector<3x64xf32>
      %30 = arith.mulf %29, %29 : vector<3x64xf32>
      %cst_18 = arith.constant dense<0.000000e+00> : vector<64xf32>
      %31 = vector.multi_reduction <add>, %30, %cst_18 [0] : vector<3x64xf32> to vector<64xf32>
      %32 = vector.shape_cast %31 : vector<64xf32> to vector<1x64xf32>
      %c0_19 = arith.constant 0 : index
      %c0_20 = arith.constant 0 : index
      %33 = vector.load %arg6[%c0_19, %c0_20] : memref<1x64xf32, #tpu.memory_space<vmem>>, vector<1x64xf32>
      %34 = arith.minimumf %33, %32 : vector<1x64xf32>
      %c0_21 = arith.constant 0 : index
      %c0_22 = arith.constant 0 : index
      %35 = vector.load %arg6[%c0_21, %c0_22] : memref<1x64xf32, #tpu.memory_space<vmem>>, vector<1x64xf32>
      tpu.vector_store %arg6[%c0_21, %c0_22], %34 {strides = array<i32>} : memref<1x64xf32, #tpu.memory_space<vmem>>, vector<1x64xf32>,
      %cst_23 = arith.constant dense<0xFF800000> : vector<1xf32>
      %36 = vector.multi_reduction <maximumf>, %34, %cst_23 [1] : vector<1x64xf32> to vector<1xf32>
      %37 = vector.shape_cast %36 : vector<1xf32> to vector<1x1xf32>
      %38 = vector.broadcast %37 : vector<1x1xf32> to vector<1x64xf32>
      %39 = arith.cmpf oeq, %34, %38 : vector<1x64xf32>
      %cst_24 = arith.constant 6.400000e+01 : f32
      %40 = vector.broadcast %cst_24 : f32 to vector<1x64xf32>
      %41 = arith.select %39, %3, %40 : vector<1x64xi1>, vector<1x64xf32>
      %cst_25 = arith.constant dense<0x7F800000> : vector<1xf32>
      %42 = vector.multi_reduction <minimumf>, %41, %cst_25 [1] : vector<1x64xf32> to vector<1xf32>
      %43 = vector.shape_cast %42 : vector<1xf32> to vector<1x1xf32>
      %c1_i32_26 = arith.constant 1 : i32
      %44 = arith.addi %arg7, %c1_i32_26 : i32
      %c8_i32_27 = arith.constant 8 : i32
      %45 = arith.cmpi slt, %44, %c8_i32_27 : i32
      %46 = arith.extui %45 : i1 to i32
      %c0_i32_28 = arith.constant 0 : i32
      %47 = arith.cmpi ne, %46, %c0_i32_28 : i32
      scf.if %47 {
        %48 = vector.broadcast %43 : vector<1x1xf32> to vector<1x64xf32>
        %49 = arith.cmpf oeq, %3, %48 : vector<1x64xf32>
        %50 = arith.extui %49 : vector<1x64xi1> to vector<1x64xi32>
        %51 = arith.sitofp %50 : vector<1x64xi32> to vector<1x64xf32>
        %c1_i32_29 = arith.constant 1 : i32
        %52 = arith.addi %arg7, %c1_i32_29 : i32
        %53 = arith.index_cast %52 : i32 to index
        %c0_30 = arith.constant 0 : index
        %54 = vector.load %arg5[%53, %c0_30] : memref<8x64xf32, #tpu.memory_space<vmem>>, vector<1x64xf32>
        tpu.vector_store %arg5[%53, %c0_30], %51 {strides = array<i32>} : memref<8x64xf32, #tpu.memory_space<vmem>>, vector<1x64xf32>,
      } else {
      }
    }
    %c8_i32_6 = arith.constant 8 : i32
    %c0_7 = arith.constant 0 : index
    %c0_8 = arith.constant 0 : index
    %15 = vector.load %arg5[%c0_7, %c0_8] : memref<8x64xf32, #tpu.memory_space<vmem>>, vector<8x64xf32>
    %c0_9 = arith.constant 0 : index
    %c0_10 = arith.constant 0 : index
    %c0_11 = arith.constant 0 : index
    %16 = vector.load %arg2[%c0_9, %c0_10, %c0_11] : memref<1x64x3xf32, #tpu.memory_space<vmem>>, vector<1x64x3xf32>
    %17 = vector.shape_cast %16 : vector<1x64x3xf32> to vector<64x3xf32>
    %cst_12 = arith.constant dense<0.000000e+00> : vector<8x3xf32>
    %18 = tpu.matmul %15, %17, %cst_12 {dimension_numbers = #tpu.dot_dimension_numbers<[1], [0], [0], [1], [0, 0, 1, 1], [], []>} : vector<8x64xf32>, vector<64x3xf32>, vector<8x3xf32> -> vector<8x3xf32>
    %c0_13 = arith.constant 0 : index
    %c0_14 = arith.constant 0 : index
    %c0_15 = arith.constant 0 : index
    %19 = vector.load %arg4[%c0_13, %c0_14, %c0_15] : memref<1x8x3xf32, #tpu.memory_space<vmem>>, vector<1x8x3xf32>
    %20 = vector.shape_cast %19 : vector<1x8x3xf32> to vector<8x3xf32>
    %21 = vector.shape_cast %18 : vector<8x3xf32> to vector<1x8x3xf32>
    tpu.vector_store %arg4[%c0_13, %c0_14, %c0_15], %21 {strides = array<i32>} : memref<1x8x3xf32, #tpu.memory_space<vmem>>, vector<1x8x3xf32>,
    return
  }
  func.func @transform_0(%arg0: i32, %arg1: memref<2xi32, #tpu.memory_space<smem>>) -> (i32, i32, i32) {
    %c0_i32 = arith.constant 0 : i32
    %c0_i32_0 = arith.constant 0 : i32
    %c0_i32_1 = arith.constant 0 : i32
    return %arg0, %c0_i32, %c0_i32_0 : i32, i32, i32
  }
  func.func @transform_1(%arg0: i32, %arg1: memref<2xi32, #tpu.memory_space<smem>>) -> (i32, i32, i32) {
    %c0_i32 = arith.constant 0 : i32
    %c0_i32_0 = arith.constant 0 : i32
    %c0_i32_1 = arith.constant 0 : i32
    return %arg0, %c0_i32, %c0_i32_0 : i32, i32, i32
  }
  func.func @transform_2(%arg0: i32, %arg1: memref<2xi32, #tpu.memory_space<smem>>) -> (i32, i32, i32) {
    %c0_i32 = arith.constant 0 : i32
    %c0_i32_0 = arith.constant 0 : i32
    %c0_i32_1 = arith.constant 0 : i32
    return %arg0, %c0_i32, %c0_i32_0 : i32, i32, i32
  }
}

module attributes {stable_mosaic.version = 11 : i64} {
  func.func @_knn_group_kernel(%arg0: i32, %arg1: i32, %arg2: memref<1x8x3xf32, #tpu.memory_space<vmem>>, %arg3: memref<1x8x4xf32, #tpu.memory_space<vmem>>, %arg4: memref<1x1x64xf32, #tpu.memory_space<vmem>>, %arg5: memref<1x3x64xf32, #tpu.memory_space<vmem>>, %arg6: memref<1x64x4xf32, #tpu.memory_space<vmem>>, %arg7: memref<1x8x16x4xf32, #tpu.memory_space<vmem>>) attributes {dimension_semantics = [#tpu.dimension_semantics<parallel>, #tpu.dimension_semantics<parallel>], iteration_bounds = array<i64: 2, 1>, scalar_prefetch = 0 : i64, scratch_operands = 0 : i64, tpu.core_type = #tpu.core_type<tc>, window_params = [{transform_indices = @transform_0, window_bounds = array<i64: 1, 8, 3>}, {transform_indices = @transform_1, window_bounds = array<i64: 1, 8, 4>}, {transform_indices = @transform_2, window_bounds = array<i64: 1, 1, 64>}, {transform_indices = @transform_3, window_bounds = array<i64: 1, 3, 64>}, {transform_indices = @transform_4, window_bounds = array<i64: 1, 64, 4>}, {transform_indices = @transform_5, window_bounds = array<i64: 1, 8, 16, 4>}]} {
    %c0 = arith.constant 0 : index
    %c0_0 = arith.constant 0 : index
    %c0_1 = arith.constant 0 : index
    %0 = vector.load %arg2[%c0, %c0_0, %c0_1] : memref<1x8x3xf32, #tpu.memory_space<vmem>>, vector<1x8x3xf32>
    %1 = vector.shape_cast %0 : vector<1x8x3xf32> to vector<8x3xf32>
    %c0_2 = arith.constant 0 : index
    %c0_3 = arith.constant 0 : index
    %c0_4 = arith.constant 0 : index
    %2 = vector.load %arg3[%c0_2, %c0_3, %c0_4] : memref<1x8x4xf32, #tpu.memory_space<vmem>>, vector<1x8x4xf32>
    %3 = vector.shape_cast %2 : vector<1x8x4xf32> to vector<8x4xf32>
    %c0_5 = arith.constant 0 : index
    %c0_6 = arith.constant 0 : index
    %c0_7 = arith.constant 0 : index
    %4 = vector.load %arg5[%c0_5, %c0_6, %c0_7] : memref<1x3x64xf32, #tpu.memory_space<vmem>>, vector<1x3x64xf32>
    %5 = vector.shape_cast %4 : vector<1x3x64xf32> to vector<3x64xf32>
    %c0_8 = arith.constant 0 : index
    %c0_9 = arith.constant 0 : index
    %c0_10 = arith.constant 0 : index
    %6 = vector.load %arg4[%c0_8, %c0_9, %c0_10] : memref<1x1x64xf32, #tpu.memory_space<vmem>>, vector<1x1x64xf32>
    %7 = vector.shape_cast %6 : vector<1x1x64xf32> to vector<1x64xf32>
    %c0_11 = arith.constant 0 : index
    %c0_12 = arith.constant 0 : index
    %c0_13 = arith.constant 0 : index
    %8 = vector.load %arg6[%c0_11, %c0_12, %c0_13] : memref<1x64x4xf32, #tpu.memory_space<vmem>>, vector<1x64x4xf32>
    %9 = vector.shape_cast %8 : vector<1x64x4xf32> to vector<64x4xf32>
    %10 = arith.mulf %1, %1 : vector<8x3xf32>
    %cst = arith.constant dense<0.000000e+00> : vector<8xf32>
    %11 = vector.multi_reduction <add>, %10, %cst [1] : vector<8x3xf32> to vector<8xf32>
    %12 = vector.shape_cast %11 : vector<8xf32> to vector<8x1xf32>
    %cst_14 = arith.constant dense<0.000000e+00> : vector<8x64xf32>
    %13 = tpu.matmul %1, %5, %cst_14 {dimension_numbers = #tpu.dot_dimension_numbers<[1], [0], [0], [1], [0, 0, 1, 1], [], []>} : vector<8x3xf32>, vector<3x64xf32>, vector<8x64xf32> -> vector<8x64xf32>
    %14 = vector.broadcast %12 : vector<8x1xf32> to vector<8x64xf32>
    %15 = vector.broadcast %7 : vector<1x64xf32> to vector<8x64xf32>
    %16 = arith.addf %14, %15 : vector<8x64xf32>
    %cst_15 = arith.constant 2.000000e+00 : f32
    %17 = vector.broadcast %cst_15 : f32 to vector<8x64xf32>
    %18 = arith.mulf %17, %13 : vector<8x64xf32>
    %19 = arith.subf %16, %18 : vector<8x64xf32>
    %20 = tpu.iota {dimensions = array<i32: 1>} : vector<8x64xi32>
    %21 = arith.sitofp %20 : vector<8x64xi32> to vector<8x64xf32>
    %c0_i32 = arith.constant 0 : i32
    %22 = vector.broadcast %c0_i32 : i32 to vector<8x64xi32>
    %cst_16 = arith.constant dense<0x7F800000> : vector<8xf32>
    %23 = vector.multi_reduction <minimumf>, %19, %cst_16 [1] : vector<8x64xf32> to vector<8xf32>
    %24 = vector.shape_cast %23 : vector<8xf32> to vector<8x1xf32>
    %25 = vector.broadcast %24 : vector<8x1xf32> to vector<8x64xf32>
    %26 = arith.cmpf oeq, %19, %25 : vector<8x64xf32>
    %cst_17 = arith.constant 6.400000e+01 : f32
    %27 = vector.broadcast %cst_17 : f32 to vector<8x64xf32>
    %28 = arith.select %26, %21, %27 : vector<8x64xi1>, vector<8x64xf32>
    %cst_18 = arith.constant dense<0x7F800000> : vector<8xf32>
    %29 = vector.multi_reduction <minimumf>, %28, %cst_18 [1] : vector<8x64xf32> to vector<8xf32>
    %30 = vector.shape_cast %29 : vector<8xf32> to vector<8x1xf32>
    %31 = vector.broadcast %30 : vector<8x1xf32> to vector<8x64xf32>
    %32 = arith.cmpf oeq, %21, %31 : vector<8x64xf32>
    %c1_i32 = arith.constant 1 : i32
    %33 = vector.broadcast %c1_i32 : i32 to vector<8x64xi32>
    %34 = arith.select %32, %33, %22 : vector<8x64xi1>, vector<8x64xi32>
    %cst_19 = arith.constant 1.000000e+30 : f32
    %35 = vector.broadcast %cst_19 : f32 to vector<8x64xf32>
    %36 = arith.select %32, %35, %19 : vector<8x64xi1>, vector<8x64xf32>
    %cst_20 = arith.constant dense<0x7F800000> : vector<8xf32>
    %37 = vector.multi_reduction <minimumf>, %36, %cst_20 [1] : vector<8x64xf32> to vector<8xf32>
    %38 = vector.shape_cast %37 : vector<8xf32> to vector<8x1xf32>
    %39 = vector.broadcast %38 : vector<8x1xf32> to vector<8x64xf32>
    %40 = arith.cmpf oeq, %36, %39 : vector<8x64xf32>
    %cst_21 = arith.constant 6.400000e+01 : f32
    %41 = vector.broadcast %cst_21 : f32 to vector<8x64xf32>
    %42 = arith.select %40, %21, %41 : vector<8x64xi1>, vector<8x64xf32>
    %cst_22 = arith.constant dense<0x7F800000> : vector<8xf32>
    %43 = vector.multi_reduction <minimumf>, %42, %cst_22 [1] : vector<8x64xf32> to vector<8xf32>
    %44 = vector.shape_cast %43 : vector<8xf32> to vector<8x1xf32>
    %45 = vector.broadcast %44 : vector<8x1xf32> to vector<8x64xf32>
    %46 = arith.cmpf oeq, %21, %45 : vector<8x64xf32>
    %c2_i32 = arith.constant 2 : i32
    %47 = vector.broadcast %c2_i32 : i32 to vector<8x64xi32>
    %48 = arith.select %46, %47, %34 : vector<8x64xi1>, vector<8x64xi32>
    %cst_23 = arith.constant 1.000000e+30 : f32
    %49 = vector.broadcast %cst_23 : f32 to vector<8x64xf32>
    %50 = arith.select %46, %49, %36 : vector<8x64xi1>, vector<8x64xf32>
    %cst_24 = arith.constant dense<0x7F800000> : vector<8xf32>
    %51 = vector.multi_reduction <minimumf>, %50, %cst_24 [1] : vector<8x64xf32> to vector<8xf32>
    %52 = vector.shape_cast %51 : vector<8xf32> to vector<8x1xf32>
    %53 = vector.broadcast %52 : vector<8x1xf32> to vector<8x64xf32>
    %54 = arith.cmpf oeq, %50, %53 : vector<8x64xf32>
    %cst_25 = arith.constant 6.400000e+01 : f32
    %55 = vector.broadcast %cst_25 : f32 to vector<8x64xf32>
    %56 = arith.select %54, %21, %55 : vector<8x64xi1>, vector<8x64xf32>
    %cst_26 = arith.constant dense<0x7F800000> : vector<8xf32>
    %57 = vector.multi_reduction <minimumf>, %56, %cst_26 [1] : vector<8x64xf32> to vector<8xf32>
    %58 = vector.shape_cast %57 : vector<8xf32> to vector<8x1xf32>
    %59 = vector.broadcast %58 : vector<8x1xf32> to vector<8x64xf32>
    %60 = arith.cmpf oeq, %21, %59 : vector<8x64xf32>
    %c3_i32 = arith.constant 3 : i32
    %61 = vector.broadcast %c3_i32 : i32 to vector<8x64xi32>
    %62 = arith.select %60, %61, %48 : vector<8x64xi1>, vector<8x64xi32>
    %cst_27 = arith.constant 1.000000e+30 : f32
    %63 = vector.broadcast %cst_27 : f32 to vector<8x64xf32>
    %64 = arith.select %60, %63, %50 : vector<8x64xi1>, vector<8x64xf32>
    %cst_28 = arith.constant dense<0x7F800000> : vector<8xf32>
    %65 = vector.multi_reduction <minimumf>, %64, %cst_28 [1] : vector<8x64xf32> to vector<8xf32>
    %66 = vector.shape_cast %65 : vector<8xf32> to vector<8x1xf32>
    %67 = vector.broadcast %66 : vector<8x1xf32> to vector<8x64xf32>
    %68 = arith.cmpf oeq, %64, %67 : vector<8x64xf32>
    %cst_29 = arith.constant 6.400000e+01 : f32
    %69 = vector.broadcast %cst_29 : f32 to vector<8x64xf32>
    %70 = arith.select %68, %21, %69 : vector<8x64xi1>, vector<8x64xf32>
    %cst_30 = arith.constant dense<0x7F800000> : vector<8xf32>
    %71 = vector.multi_reduction <minimumf>, %70, %cst_30 [1] : vector<8x64xf32> to vector<8xf32>
    %72 = vector.shape_cast %71 : vector<8xf32> to vector<8x1xf32>
    %73 = vector.broadcast %72 : vector<8x1xf32> to vector<8x64xf32>
    %74 = arith.cmpf oeq, %21, %73 : vector<8x64xf32>
    %c4_i32 = arith.constant 4 : i32
    %75 = vector.broadcast %c4_i32 : i32 to vector<8x64xi32>
    %76 = arith.select %74, %75, %62 : vector<8x64xi1>, vector<8x64xi32>
    %cst_31 = arith.constant 1.000000e+30 : f32
    %77 = vector.broadcast %cst_31 : f32 to vector<8x64xf32>
    %78 = arith.select %74, %77, %64 : vector<8x64xi1>, vector<8x64xf32>
    %cst_32 = arith.constant dense<0x7F800000> : vector<8xf32>
    %79 = vector.multi_reduction <minimumf>, %78, %cst_32 [1] : vector<8x64xf32> to vector<8xf32>
    %80 = vector.shape_cast %79 : vector<8xf32> to vector<8x1xf32>
    %81 = vector.broadcast %80 : vector<8x1xf32> to vector<8x64xf32>
    %82 = arith.cmpf oeq, %78, %81 : vector<8x64xf32>
    %cst_33 = arith.constant 6.400000e+01 : f32
    %83 = vector.broadcast %cst_33 : f32 to vector<8x64xf32>
    %84 = arith.select %82, %21, %83 : vector<8x64xi1>, vector<8x64xf32>
    %cst_34 = arith.constant dense<0x7F800000> : vector<8xf32>
    %85 = vector.multi_reduction <minimumf>, %84, %cst_34 [1] : vector<8x64xf32> to vector<8xf32>
    %86 = vector.shape_cast %85 : vector<8xf32> to vector<8x1xf32>
    %87 = vector.broadcast %86 : vector<8x1xf32> to vector<8x64xf32>
    %88 = arith.cmpf oeq, %21, %87 : vector<8x64xf32>
    %c5_i32 = arith.constant 5 : i32
    %89 = vector.broadcast %c5_i32 : i32 to vector<8x64xi32>
    %90 = arith.select %88, %89, %76 : vector<8x64xi1>, vector<8x64xi32>
    %cst_35 = arith.constant 1.000000e+30 : f32
    %91 = vector.broadcast %cst_35 : f32 to vector<8x64xf32>
    %92 = arith.select %88, %91, %78 : vector<8x64xi1>, vector<8x64xf32>
    %cst_36 = arith.constant dense<0x7F800000> : vector<8xf32>
    %93 = vector.multi_reduction <minimumf>, %92, %cst_36 [1] : vector<8x64xf32> to vector<8xf32>
    %94 = vector.shape_cast %93 : vector<8xf32> to vector<8x1xf32>
    %95 = vector.broadcast %94 : vector<8x1xf32> to vector<8x64xf32>
    %96 = arith.cmpf oeq, %92, %95 : vector<8x64xf32>
    %cst_37 = arith.constant 6.400000e+01 : f32
    %97 = vector.broadcast %cst_37 : f32 to vector<8x64xf32>
    %98 = arith.select %96, %21, %97 : vector<8x64xi1>, vector<8x64xf32>
    %cst_38 = arith.constant dense<0x7F800000> : vector<8xf32>
    %99 = vector.multi_reduction <minimumf>, %98, %cst_38 [1] : vector<8x64xf32> to vector<8xf32>
    %100 = vector.shape_cast %99 : vector<8xf32> to vector<8x1xf32>
    %101 = vector.broadcast %100 : vector<8x1xf32> to vector<8x64xf32>
    %102 = arith.cmpf oeq, %21, %101 : vector<8x64xf32>
    %c6_i32 = arith.constant 6 : i32
    %103 = vector.broadcast %c6_i32 : i32 to vector<8x64xi32>
    %104 = arith.select %102, %103, %90 : vector<8x64xi1>, vector<8x64xi32>
    %cst_39 = arith.constant 1.000000e+30 : f32
    %105 = vector.broadcast %cst_39 : f32 to vector<8x64xf32>
    %106 = arith.select %102, %105, %92 : vector<8x64xi1>, vector<8x64xf32>
    %cst_40 = arith.constant dense<0x7F800000> : vector<8xf32>
    %107 = vector.multi_reduction <minimumf>, %106, %cst_40 [1] : vector<8x64xf32> to vector<8xf32>
    %108 = vector.shape_cast %107 : vector<8xf32> to vector<8x1xf32>
    %109 = vector.broadcast %108 : vector<8x1xf32> to vector<8x64xf32>
    %110 = arith.cmpf oeq, %106, %109 : vector<8x64xf32>
    %cst_41 = arith.constant 6.400000e+01 : f32
    %111 = vector.broadcast %cst_41 : f32 to vector<8x64xf32>
    %112 = arith.select %110, %21, %111 : vector<8x64xi1>, vector<8x64xf32>
    %cst_42 = arith.constant dense<0x7F800000> : vector<8xf32>
    %113 = vector.multi_reduction <minimumf>, %112, %cst_42 [1] : vector<8x64xf32> to vector<8xf32>
    %114 = vector.shape_cast %113 : vector<8xf32> to vector<8x1xf32>
    %115 = vector.broadcast %114 : vector<8x1xf32> to vector<8x64xf32>
    %116 = arith.cmpf oeq, %21, %115 : vector<8x64xf32>
    %c7_i32 = arith.constant 7 : i32
    %117 = vector.broadcast %c7_i32 : i32 to vector<8x64xi32>
    %118 = arith.select %116, %117, %104 : vector<8x64xi1>, vector<8x64xi32>
    %cst_43 = arith.constant 1.000000e+30 : f32
    %119 = vector.broadcast %cst_43 : f32 to vector<8x64xf32>
    %120 = arith.select %116, %119, %106 : vector<8x64xi1>, vector<8x64xf32>
    %cst_44 = arith.constant dense<0x7F800000> : vector<8xf32>
    %121 = vector.multi_reduction <minimumf>, %120, %cst_44 [1] : vector<8x64xf32> to vector<8xf32>
    %122 = vector.shape_cast %121 : vector<8xf32> to vector<8x1xf32>
    %123 = vector.broadcast %122 : vector<8x1xf32> to vector<8x64xf32>
    %124 = arith.cmpf oeq, %120, %123 : vector<8x64xf32>
    %cst_45 = arith.constant 6.400000e+01 : f32
    %125 = vector.broadcast %cst_45 : f32 to vector<8x64xf32>
    %126 = arith.select %124, %21, %125 : vector<8x64xi1>, vector<8x64xf32>
    %cst_46 = arith.constant dense<0x7F800000> : vector<8xf32>
    %127 = vector.multi_reduction <minimumf>, %126, %cst_46 [1] : vector<8x64xf32> to vector<8xf32>
    %128 = vector.shape_cast %127 : vector<8xf32> to vector<8x1xf32>
    %129 = vector.broadcast %128 : vector<8x1xf32> to vector<8x64xf32>
    %130 = arith.cmpf oeq, %21, %129 : vector<8x64xf32>
    %c8_i32 = arith.constant 8 : i32
    %131 = vector.broadcast %c8_i32 : i32 to vector<8x64xi32>
    %132 = arith.select %130, %131, %118 : vector<8x64xi1>, vector<8x64xi32>
    %cst_47 = arith.constant 1.000000e+30 : f32
    %133 = vector.broadcast %cst_47 : f32 to vector<8x64xf32>
    %134 = arith.select %130, %133, %120 : vector<8x64xi1>, vector<8x64xf32>
    %cst_48 = arith.constant dense<0x7F800000> : vector<8xf32>
    %135 = vector.multi_reduction <minimumf>, %134, %cst_48 [1] : vector<8x64xf32> to vector<8xf32>
    %136 = vector.shape_cast %135 : vector<8xf32> to vector<8x1xf32>
    %137 = vector.broadcast %136 : vector<8x1xf32> to vector<8x64xf32>
    %138 = arith.cmpf oeq, %134, %137 : vector<8x64xf32>
    %cst_49 = arith.constant 6.400000e+01 : f32
    %139 = vector.broadcast %cst_49 : f32 to vector<8x64xf32>
    %140 = arith.select %138, %21, %139 : vector<8x64xi1>, vector<8x64xf32>
    %cst_50 = arith.constant dense<0x7F800000> : vector<8xf32>
    %141 = vector.multi_reduction <minimumf>, %140, %cst_50 [1] : vector<8x64xf32> to vector<8xf32>
    %142 = vector.shape_cast %141 : vector<8xf32> to vector<8x1xf32>
    %143 = vector.broadcast %142 : vector<8x1xf32> to vector<8x64xf32>
    %144 = arith.cmpf oeq, %21, %143 : vector<8x64xf32>
    %c9_i32 = arith.constant 9 : i32
    %145 = vector.broadcast %c9_i32 : i32 to vector<8x64xi32>
    %146 = arith.select %144, %145, %132 : vector<8x64xi1>, vector<8x64xi32>
    %cst_51 = arith.constant 1.000000e+30 : f32
    %147 = vector.broadcast %cst_51 : f32 to vector<8x64xf32>
    %148 = arith.select %144, %147, %134 : vector<8x64xi1>, vector<8x64xf32>
    %cst_52 = arith.constant dense<0x7F800000> : vector<8xf32>
    %149 = vector.multi_reduction <minimumf>, %148, %cst_52 [1] : vector<8x64xf32> to vector<8xf32>
    %150 = vector.shape_cast %149 : vector<8xf32> to vector<8x1xf32>
    %151 = vector.broadcast %150 : vector<8x1xf32> to vector<8x64xf32>
    %152 = arith.cmpf oeq, %148, %151 : vector<8x64xf32>
    %cst_53 = arith.constant 6.400000e+01 : f32
    %153 = vector.broadcast %cst_53 : f32 to vector<8x64xf32>
    %154 = arith.select %152, %21, %153 : vector<8x64xi1>, vector<8x64xf32>
    %cst_54 = arith.constant dense<0x7F800000> : vector<8xf32>
    %155 = vector.multi_reduction <minimumf>, %154, %cst_54 [1] : vector<8x64xf32> to vector<8xf32>
    %156 = vector.shape_cast %155 : vector<8xf32> to vector<8x1xf32>
    %157 = vector.broadcast %156 : vector<8x1xf32> to vector<8x64xf32>
    %158 = arith.cmpf oeq, %21, %157 : vector<8x64xf32>
    %c10_i32 = arith.constant 10 : i32
    %159 = vector.broadcast %c10_i32 : i32 to vector<8x64xi32>
    %160 = arith.select %158, %159, %146 : vector<8x64xi1>, vector<8x64xi32>
    %cst_55 = arith.constant 1.000000e+30 : f32
    %161 = vector.broadcast %cst_55 : f32 to vector<8x64xf32>
    %162 = arith.select %158, %161, %148 : vector<8x64xi1>, vector<8x64xf32>
    %cst_56 = arith.constant dense<0x7F800000> : vector<8xf32>
    %163 = vector.multi_reduction <minimumf>, %162, %cst_56 [1] : vector<8x64xf32> to vector<8xf32>
    %164 = vector.shape_cast %163 : vector<8xf32> to vector<8x1xf32>
    %165 = vector.broadcast %164 : vector<8x1xf32> to vector<8x64xf32>
    %166 = arith.cmpf oeq, %162, %165 : vector<8x64xf32>
    %cst_57 = arith.constant 6.400000e+01 : f32
    %167 = vector.broadcast %cst_57 : f32 to vector<8x64xf32>
    %168 = arith.select %166, %21, %167 : vector<8x64xi1>, vector<8x64xf32>
    %cst_58 = arith.constant dense<0x7F800000> : vector<8xf32>
    %169 = vector.multi_reduction <minimumf>, %168, %cst_58 [1] : vector<8x64xf32> to vector<8xf32>
    %170 = vector.shape_cast %169 : vector<8xf32> to vector<8x1xf32>
    %171 = vector.broadcast %170 : vector<8x1xf32> to vector<8x64xf32>
    %172 = arith.cmpf oeq, %21, %171 : vector<8x64xf32>
    %c11_i32 = arith.constant 11 : i32
    %173 = vector.broadcast %c11_i32 : i32 to vector<8x64xi32>
    %174 = arith.select %172, %173, %160 : vector<8x64xi1>, vector<8x64xi32>
    %cst_59 = arith.constant 1.000000e+30 : f32
    %175 = vector.broadcast %cst_59 : f32 to vector<8x64xf32>
    %176 = arith.select %172, %175, %162 : vector<8x64xi1>, vector<8x64xf32>
    %cst_60 = arith.constant dense<0x7F800000> : vector<8xf32>
    %177 = vector.multi_reduction <minimumf>, %176, %cst_60 [1] : vector<8x64xf32> to vector<8xf32>
    %178 = vector.shape_cast %177 : vector<8xf32> to vector<8x1xf32>
    %179 = vector.broadcast %178 : vector<8x1xf32> to vector<8x64xf32>
    %180 = arith.cmpf oeq, %176, %179 : vector<8x64xf32>
    %cst_61 = arith.constant 6.400000e+01 : f32
    %181 = vector.broadcast %cst_61 : f32 to vector<8x64xf32>
    %182 = arith.select %180, %21, %181 : vector<8x64xi1>, vector<8x64xf32>
    %cst_62 = arith.constant dense<0x7F800000> : vector<8xf32>
    %183 = vector.multi_reduction <minimumf>, %182, %cst_62 [1] : vector<8x64xf32> to vector<8xf32>
    %184 = vector.shape_cast %183 : vector<8xf32> to vector<8x1xf32>
    %185 = vector.broadcast %184 : vector<8x1xf32> to vector<8x64xf32>
    %186 = arith.cmpf oeq, %21, %185 : vector<8x64xf32>
    %c12_i32 = arith.constant 12 : i32
    %187 = vector.broadcast %c12_i32 : i32 to vector<8x64xi32>
    %188 = arith.select %186, %187, %174 : vector<8x64xi1>, vector<8x64xi32>
    %cst_63 = arith.constant 1.000000e+30 : f32
    %189 = vector.broadcast %cst_63 : f32 to vector<8x64xf32>
    %190 = arith.select %186, %189, %176 : vector<8x64xi1>, vector<8x64xf32>
    %cst_64 = arith.constant dense<0x7F800000> : vector<8xf32>
    %191 = vector.multi_reduction <minimumf>, %190, %cst_64 [1] : vector<8x64xf32> to vector<8xf32>
    %192 = vector.shape_cast %191 : vector<8xf32> to vector<8x1xf32>
    %193 = vector.broadcast %192 : vector<8x1xf32> to vector<8x64xf32>
    %194 = arith.cmpf oeq, %190, %193 : vector<8x64xf32>
    %cst_65 = arith.constant 6.400000e+01 : f32
    %195 = vector.broadcast %cst_65 : f32 to vector<8x64xf32>
    %196 = arith.select %194, %21, %195 : vector<8x64xi1>, vector<8x64xf32>
    %cst_66 = arith.constant dense<0x7F800000> : vector<8xf32>
    %197 = vector.multi_reduction <minimumf>, %196, %cst_66 [1] : vector<8x64xf32> to vector<8xf32>
    %198 = vector.shape_cast %197 : vector<8xf32> to vector<8x1xf32>
    %199 = vector.broadcast %198 : vector<8x1xf32> to vector<8x64xf32>
    %200 = arith.cmpf oeq, %21, %199 : vector<8x64xf32>
    %c13_i32 = arith.constant 13 : i32
    %201 = vector.broadcast %c13_i32 : i32 to vector<8x64xi32>
    %202 = arith.select %200, %201, %188 : vector<8x64xi1>, vector<8x64xi32>
    %cst_67 = arith.constant 1.000000e+30 : f32
    %203 = vector.broadcast %cst_67 : f32 to vector<8x64xf32>
    %204 = arith.select %200, %203, %190 : vector<8x64xi1>, vector<8x64xf32>
    %cst_68 = arith.constant dense<0x7F800000> : vector<8xf32>
    %205 = vector.multi_reduction <minimumf>, %204, %cst_68 [1] : vector<8x64xf32> to vector<8xf32>
    %206 = vector.shape_cast %205 : vector<8xf32> to vector<8x1xf32>
    %207 = vector.broadcast %206 : vector<8x1xf32> to vector<8x64xf32>
    %208 = arith.cmpf oeq, %204, %207 : vector<8x64xf32>
    %cst_69 = arith.constant 6.400000e+01 : f32
    %209 = vector.broadcast %cst_69 : f32 to vector<8x64xf32>
    %210 = arith.select %208, %21, %209 : vector<8x64xi1>, vector<8x64xf32>
    %cst_70 = arith.constant dense<0x7F800000> : vector<8xf32>
    %211 = vector.multi_reduction <minimumf>, %210, %cst_70 [1] : vector<8x64xf32> to vector<8xf32>
    %212 = vector.shape_cast %211 : vector<8xf32> to vector<8x1xf32>
    %213 = vector.broadcast %212 : vector<8x1xf32> to vector<8x64xf32>
    %214 = arith.cmpf oeq, %21, %213 : vector<8x64xf32>
    %c14_i32 = arith.constant 14 : i32
    %215 = vector.broadcast %c14_i32 : i32 to vector<8x64xi32>
    %216 = arith.select %214, %215, %202 : vector<8x64xi1>, vector<8x64xi32>
    %cst_71 = arith.constant 1.000000e+30 : f32
    %217 = vector.broadcast %cst_71 : f32 to vector<8x64xf32>
    %218 = arith.select %214, %217, %204 : vector<8x64xi1>, vector<8x64xf32>
    %cst_72 = arith.constant dense<0x7F800000> : vector<8xf32>
    %219 = vector.multi_reduction <minimumf>, %218, %cst_72 [1] : vector<8x64xf32> to vector<8xf32>
    %220 = vector.shape_cast %219 : vector<8xf32> to vector<8x1xf32>
    %221 = vector.broadcast %220 : vector<8x1xf32> to vector<8x64xf32>
    %222 = arith.cmpf oeq, %218, %221 : vector<8x64xf32>
    %cst_73 = arith.constant 6.400000e+01 : f32
    %223 = vector.broadcast %cst_73 : f32 to vector<8x64xf32>
    %224 = arith.select %222, %21, %223 : vector<8x64xi1>, vector<8x64xf32>
    %cst_74 = arith.constant dense<0x7F800000> : vector<8xf32>
    %225 = vector.multi_reduction <minimumf>, %224, %cst_74 [1] : vector<8x64xf32> to vector<8xf32>
    %226 = vector.shape_cast %225 : vector<8xf32> to vector<8x1xf32>
    %227 = vector.broadcast %226 : vector<8x1xf32> to vector<8x64xf32>
    %228 = arith.cmpf oeq, %21, %227 : vector<8x64xf32>
    %c15_i32 = arith.constant 15 : i32
    %229 = vector.broadcast %c15_i32 : i32 to vector<8x64xi32>
    %230 = arith.select %228, %229, %216 : vector<8x64xi1>, vector<8x64xi32>
    %cst_75 = arith.constant 1.000000e+30 : f32
    %231 = vector.broadcast %cst_75 : f32 to vector<8x64xf32>
    %232 = arith.select %228, %231, %218 : vector<8x64xi1>, vector<8x64xf32>
    %cst_76 = arith.constant dense<0x7F800000> : vector<8xf32>
    %233 = vector.multi_reduction <minimumf>, %232, %cst_76 [1] : vector<8x64xf32> to vector<8xf32>
    %234 = vector.shape_cast %233 : vector<8xf32> to vector<8x1xf32>
    %235 = vector.broadcast %234 : vector<8x1xf32> to vector<8x64xf32>
    %236 = arith.cmpf oeq, %232, %235 : vector<8x64xf32>
    %cst_77 = arith.constant 6.400000e+01 : f32
    %237 = vector.broadcast %cst_77 : f32 to vector<8x64xf32>
    %238 = arith.select %236, %21, %237 : vector<8x64xi1>, vector<8x64xf32>
    %cst_78 = arith.constant dense<0x7F800000> : vector<8xf32>
    %239 = vector.multi_reduction <minimumf>, %238, %cst_78 [1] : vector<8x64xf32> to vector<8xf32>
    %240 = vector.shape_cast %239 : vector<8xf32> to vector<8x1xf32>
    %241 = vector.broadcast %240 : vector<8x1xf32> to vector<8x64xf32>
    %242 = arith.cmpf oeq, %21, %241 : vector<8x64xf32>
    %c16_i32 = arith.constant 16 : i32
    %243 = vector.broadcast %c16_i32 : i32 to vector<8x64xi32>
    %244 = arith.select %242, %243, %230 : vector<8x64xi1>, vector<8x64xi32>
    %245 = tpu.iota {dimensions = array<i32: 1>} : vector<8x16x64xi32>
    %c1_i32_79 = arith.constant 1 : i32
    %246 = vector.broadcast %c1_i32_79 : i32 to vector<8x16x64xi32>
    %247 = arith.addi %245, %246 : vector<8x16x64xi32>
    %248 = vector.shape_cast %244 : vector<8x64xi32> to vector<8x1x64xi32>
    %249 = vector.shape_cast %248 : vector<8x1x64xi32> to vector<8x1x64xi32>
    %250 = vector.broadcast %249 : vector<8x1x64xi32> to vector<8x16x64xi32>
    %251 = arith.cmpi eq, %250, %247 : vector<8x16x64xi32>
    %252 = arith.extui %251 : vector<8x16x64xi1> to vector<8x16x64xi32>
    %253 = arith.sitofp %252 : vector<8x16x64xi32> to vector<8x16x64xf32>
    %254 = vector.shape_cast %253 : vector<8x16x64xf32> to vector<128x64xf32>
    %cst_80 = arith.constant dense<0.000000e+00> : vector<128x4xf32>
    %255 = tpu.matmul %254, %9, %cst_80 {dimension_numbers = #tpu.dot_dimension_numbers<[1], [0], [0], [1], [0, 0, 1, 1], [], []>} : vector<128x64xf32>, vector<64x4xf32>, vector<128x4xf32> -> vector<128x4xf32>
    %256 = vector.shape_cast %255 : vector<128x4xf32> to vector<8x16x4xf32>
    %257 = vector.shape_cast %3 : vector<8x4xf32> to vector<8x1x4xf32>
    %258 = vector.broadcast %257 : vector<8x1x4xf32> to vector<8x16x4xf32>
    %259 = arith.subf %256, %258 : vector<8x16x4xf32>
    %c0_81 = arith.constant 0 : index
    %c0_82 = arith.constant 0 : index
    %c0_83 = arith.constant 0 : index
    %c0_84 = arith.constant 0 : index
    %260 = vector.load %arg7[%c0_81, %c0_82, %c0_83, %c0_84] : memref<1x8x16x4xf32, #tpu.memory_space<vmem>>, vector<1x8x16x4xf32>
    %261 = vector.shape_cast %260 : vector<1x8x16x4xf32> to vector<8x16x4xf32>
    %262 = vector.shape_cast %259 : vector<8x16x4xf32> to vector<1x8x16x4xf32>
    tpu.vector_store %arg7[%c0_81, %c0_82, %c0_83, %c0_84], %262 {strides = array<i32>} : memref<1x8x16x4xf32, #tpu.memory_space<vmem>>, vector<1x8x16x4xf32>,
    return
  }
  func.func @transform_0(%arg0: i32, %arg1: i32) -> (i32, i32, i32) {
    %c0_i32 = arith.constant 0 : i32
    %c0_i32_0 = arith.constant 0 : i32
    return %arg0, %arg1, %c0_i32 : i32, i32, i32
  }
  func.func @transform_1(%arg0: i32, %arg1: i32) -> (i32, i32, i32) {
    %c0_i32 = arith.constant 0 : i32
    %c0_i32_0 = arith.constant 0 : i32
    return %arg0, %arg1, %c0_i32 : i32, i32, i32
  }
  func.func @transform_2(%arg0: i32, %arg1: i32) -> (i32, i32, i32) {
    %c0_i32 = arith.constant 0 : i32
    %c0_i32_0 = arith.constant 0 : i32
    %c0_i32_1 = arith.constant 0 : i32
    return %arg0, %c0_i32, %c0_i32_0 : i32, i32, i32
  }
  func.func @transform_3(%arg0: i32, %arg1: i32) -> (i32, i32, i32) {
    %c0_i32 = arith.constant 0 : i32
    %c0_i32_0 = arith.constant 0 : i32
    %c0_i32_1 = arith.constant 0 : i32
    return %arg0, %c0_i32, %c0_i32_0 : i32, i32, i32
  }
  func.func @transform_4(%arg0: i32, %arg1: i32) -> (i32, i32, i32) {
    %c0_i32 = arith.constant 0 : i32
    %c0_i32_0 = arith.constant 0 : i32
    %c0_i32_1 = arith.constant 0 : i32
    return %arg0, %c0_i32, %c0_i32_0 : i32, i32, i32
  }
  func.func @transform_5(%arg0: i32, %arg1: i32) -> (i32, i32, i32, i32) {
    %c0_i32 = arith.constant 0 : i32
    %c0_i32_0 = arith.constant 0 : i32
    %c0_i32_1 = arith.constant 0 : i32
    return %arg0, %arg1, %c0_i32, %c0_i32_0 : i32, i32, i32, i32
  }
}

</mosaic_0001>

<bundles_post_ra>
// kernel: pointcloud_grouping.2
= control target key start
LH: loop header
LB: loop body
LE: loop exit
PB: predicated region body
PF: predicated region fallthrough
CT: control target
= control target key end

     0   :  { %s579_s0 = inlined_call_operand.vmem [shape: s32[2], index: 0, kind: input, shape index: {}]   ;;  %s580_s1 = inlined_call_operand.vmem [shape: f32[2,64,3], index: 1, kind: input, shape index: {}]   ;;  %s581_s2 = inlined_call_operand.vmem [shape: f32[2,3,64], index: 2, kind: input, shape index: {}]   ;;  %s582_s3 = inlined_call_operand.vmem [shape: f32[2,8,3], index: 3, kind: output, shape index: {}]  }
   0x1   :  { %s8_s14 = sshll.u32 %s579_s0, 4  ;;  %s9_s14 = int_to_ptr.vmem [resolvable:$true] %s8_s14 }
   0x2   :  { %s464_s15 = scalar_lea.vmem %s9_s14, 16  ;;  %p469_p1 = scmp.lt.s32.totalorder %s9_s14, %s9_s14 }
   0x3   :  { %p465_p0 = scmp.ne.s32.totalorder %s9_s14, %s464_s15  ;;  %p470_p2 = scmp.lt.s32.totalorder %s464_s15, %s464_s15 }
   0x5   :  { %p471_p3 = por %p470_p2, %p469_p1 }
   0x7   :  { %p472_p4 = pnand %p471_p3, %p465_p0 }
   0x9   :  { %475 = shalt.err (!%p472_p4)  }
   0xa   :  { %s494_s16 = smov [#allocation5]  }
   0xb   :  { %11 = dma.vmem_to_smem %s9_s14, 16, %s494_s16, [#allocation4] }
   0xc   :  { %484 = dma.done.wait [#allocation4], 16 }
   0xd   :  { %485 = vsyncadd [#allocation4], 4294967280 }
   0xe   :  { %13 = sfence }
   0xf   :  { %s523_s17 = smov 0  }
  0x10 LB: > { %s384_s0 = sadd.s32 4294967295, %s488_s17   ;;  %p388_p5 = scmp.ge.s32.totalorder %s488_s17, 1  ;;  %s488_s17 = sphi %s523_s17, %s19_s17  }
  0x11   : > { %p128_p6 = scmp.lt.s32.totalorder %s488_s17, 3 }
  0x13   : > { %p129_p7 = pnand %p388_p5, %p128_p6 }
  0x14   : > { %p153_p8 = scmp.lt.s32.totalorder (!%p129_p7), %s384_s0, 1  ;;  %v167_v0 = vlaneseq (!%p129_p7)  ;;  %s170_s18 = sld [smem:[#allocation5 + %s384_s0]] (!%p129_p7)  ;;  %vm176_vm0 = vcmask (!%p129_p7), 516096   ;;  %v495_v1 = vmov (!%p129_p7), 1e+30   ;;  %v496_v6 = vmov (!%p129_p7), 0.0  }
  0x15   : > { %132 = sbr.rel (%p129_p7) target bundleno = 725 (0x2d5), region = 28  ;;  %178 = vst.msk [vmem:[#allocation3] sm:$0x1] (!%p129_p7), %vm176_vm0, %v495_v1  ;;  %s546_s5 = smov (!%p129_p7), 0  }
  0x16   : > { %v168_v2 = vand.u32 (!%p129_p7), 127, %v167_v0 }
  0x18   : > { %v169_v3 = vcvt.s32.f32 (!%p129_p7), %v168_v2 }
  0x1a   : > { %s171_s28 = scvt.s32.f32 (!%p129_p7), %s170_s18 }
  0x1c   : > { %s585_s0 = smov (!%p153_p8, %s384_s0), 1  ;;  %v172_v5 = vstv %s171_s28 }
  0x1d   : > { %s401_s19 = sshll.u32 %s585_s0, 6  ;;  %s391_s20 = sshll.u32 %s585_s0, 2  ;;  %vm173_vm1 = vcmp.eq.f32.partialorder %v169_v3, %v172_v5 }
  0x1e   : > { %s535_s23 = scalar_lea.vmem %s580_s1, %s401_s19  ;;  %s161_s26 = scalar_lea.vmem %s581_s2, %s391_s20  ;;  %v393_v7 = vsel %vm173_vm1, 1.0, %v496_v6 }
  0x1f   : > { %s392_s27 = sshll.u32 %s585_s0, 3  ;;  %v166_v4 = vld [vmem:[%s161_s26] sm:$0x7]  ;;  %177 = vst.msk [vmem:[#allocation2] sm:$0x1] %vm176_vm0, %v393_v7 }
  0x20   : > { %s543_s4 = scalar_lea.vmem %s582_s3, %s392_s27 }
  0x21 LB: >> { %s216_s6 = sadd.s32 1, %s492_s5   ;;  %s185_s7 = scalar_lea.vmem [#allocation2], %s492_s5  ;;  %vm192_vm2 = vcmask 518144   ;;  %v205_v20 = vld [vmem:[#allocation3] sm:$0x1]  ;;  %s492_s5 = sphi %s546_s5, %s583_s5  }
  0x22   : >> { %p395_p9 = scmp.ge.s32.totalorder %s216_s6, 8 }
  0x23   : >> { %v497_v28 = vmov (!%p395_p9), 0.0  }
  0x26   : >> { %v394_v8 = vld [vmem:[%s185_s7] ss:$0 sm:$0xff] }
  0x27   : >> { %v191_v9 = vmul.f32 %v394_v8, %v166_v4 }
  0x29   : >> { %v193_v10 = vsel %vm192_vm2, %v191_v9, 0.0 }
  0x2a   : >> { %194 = vadd.xlane.f32.xlu0 %v193_v10 }
  0xb7   : >> { %v195_v11 = vpop.xlane.xlu0 %194 }
  0xb8   : >> { %v196_v12 = vsub.f32 %v166_v4, %v195_v11 }
  0xba   : >> { %v197_v13 = vmul.f32 %v196_v12, %v196_v12 }
  0xbc   : >> { %v198_v14 = vsel %vm192_vm2, %v197_v13, 0.0 }
  0xbd   : >> { %v199_v15 = vrot.slane %v198_v14, 4 }
  0xbf   : >> { %v200_v16 = vadd.f32 %v199_v15, %v198_v14 }
  0xc1   : >> { %v201_v17 = vrot.slane %v200_v16, 2 }
  0xc3   : >> { %v202_v18 = vadd.f32 %v201_v17, %v200_v16 }
  0xc5   : >> { %v203_v19 = vrot.slane %v202_v18, 1 }
  0xc7   : >> { %v204_v21 = vadd.f32 %v203_v19, %v202_v18 }
  0xc9   : >> { %v206_v22 = vmin.f32 %v205_v20, %v204_v21 }
  0xcb   : >> { %v208_v23 = vsel %vm176_vm0, %v206_v22, -inf  ;;  %207 = vst.msk [vmem:[#allocation3] sm:$0x1] %vm176_vm0, %v206_v22 }
  0xcc   : >> { %209 = vmax.xlane.f32.xlu0 %v208_v23 }
 0x159   : >> { %v210_v24 = vpop.xlane.xlu0 %209 }
 0x15a   : >> { %vm211_vm3 = vcmp.eq.f32.partialorder %v206_v22, %v210_v24 }
 0x15b   : >> { %v212_v25 = vsel %vm211_vm3, %v169_v3, 64.0 }
 0x15c   : >> { %v213_v26 = vsel %vm176_vm0, %v212_v25, inf }
 0x15d   : >> { %214 = vmin.xlane.f32.xlu1 %v213_v26 }
 0x1e4   : >> { %220 = sbr.rel (%p395_p9) target bundleno = 494 (0x1ee), region = 39 }
 0x1ea   : >> { %v215_v27 = vpop.xlane.xlu1 %214 }
 0x1eb   : >> { %vm221_vm4 = vcmp.eq.f32.partialorder %v169_v3, %v215_v27 }
 0x1ec   : >> { %v396_v29 = vsel %vm221_vm4, 1.0, %v497_v28 }
 0x1ed   : >> { %397 = vst.msk [vmem:[%s185_s7 + $0x1] sm:$0x1] %vm176_vm0, %v396_v29 }
 0x1ee PF: >> { %s583_s5 = smov %s216_s6  ;;  %183 = sbr.rel (!%p395_p9) target bundleno = 33 (0x21), region = 74  ;;  %v227_v30 = vld [vmem:[%s535_s23] sm:$0xff] (%p395_p9)  ;;  %v228_v31 = vld [vmem:[%s535_s23 + $0x8] sm:$0xff] (%p395_p9)  ;;  %v229_v32 = vld [vmem:[%s535_s23 + $0x10] sm:$0xff] (%p395_p9)  ;;  %v498_v33 = vmov (%p395_p9), 0.0|0.0   ;;  %vm499_vm5 = vmmov (%p395_p9), 0  }
 0x1ef   : > { %430 = vmatprep.subr.bf16.mxu0 (%p395_p9), %v498_v33  ;;  %v431_v34 = vpack.c.bf16 (%p395_p9), %v228_v31, %v227_v30  ;;  %v230_v35 = vld [vmem:[%s535_s23 + $0x18] sm:$0xff] (%p395_p9)  ;;  %427 = vmatprep.mubr.msk.f32.mxu0 (%p395_p9), %vm499_vm5, %v496_v6  ;;  %v231_v37 = vld [vmem:[%s535_s23 + $0x20] sm:$0xff] (%p395_p9)  ;;  %v232_v38 = vld [vmem:[%s535_s23 + $0x28] sm:$0xff] (%p395_p9)  ;;  %vm235_vm6 = vcmask (%p395_p9), 523264   ;;  %vm309_vm7 = vcmask (%p395_p9), 23552  }
 0x1f0   : > { %v434_v36 = vpack.c.bf16 (%p395_p9), %v230_v35, %v229_v32  ;;  %v437_v39 = vpack.c.bf16 (%p395_p9), %v232_v38, %v231_v37  ;;  %v233_v40 = vld [vmem:[%s535_s23 + $0x30] sm:$0xff] (%p395_p9)  ;;  %v234_v41 = vld [vmem:[%s535_s23 + $0x38] sm:$0xff] (%p395_p9) }
 0x1f1   : > { %432 = vmatpush3.bf16.msra.mxu0 (%p395_p9), %v431_v34  ;;  %v440_v42 = vpack.c.bf16 (%p395_p9), %v234_v41, %v233_v40 }
 0x1f2   : > { %433 = vmatprep.subr.bf16.mxu0 (%p395_p9), %v498_v33 }
 0x1f4   : > { %v226_v43 = vld [vmem:[#allocation2] sm:$0xff] (%p395_p9) }
 0x1f5   : > { %435 = vmatpush3.bf16.msra.mxu0 %v434_v36 }
 0x1f6   : > { %436 = vmatprep.subr.bf16.mxu0 %v498_v33 }
 0x1f9   : > { %438 = vmatpush3.bf16.msra.mxu0 %v437_v39 }
 0x1fa   : > { %439 = vmatprep.subr.bf16.mxu0 %v498_v33 }
 0x1fd   : > { %441 = vmatpush3.bf16.msra.mxu0 %v440_v42 }
 0x200   : > { %428 = vmatmul.mubr.msk.f32.vlgmr.msra.gmra.mrb[0].mxu0 %vm235_vm6, %v226_v43 }
 0x2d3   : > { %v305_v44 = vpop.f32.mrb[0].mxu0 }
 0x2d4   : > { %310 = vst.msk [vmem:[%s543_s4] sm:$0xff] %vm309_vm7, %v305_v44  ;;  %v429_v45 = vpop.f32.mrb[1].mxu0 }
 0x2d5 PF: > { %s19_s17 = sadd.s32 1, %s488_s17  }
 0x2d6   : > { %p16_p10 = scmp.ge.s32.totalorder %s19_s17, 4  }
 0x2d8   :  { %18 = sbr.rel (!%p16_p10) target bundleno = 16 (0x10), region = 85 }

// kernel: pointcloud_grouping.3
= control target key start
LH: loop header
LB: loop body
LE: loop exit
PB: predicated region body
PF: predicated region fallthrough
CT: control target
= control target key end

     0   :  { %s1440_s18 = smov 0   ;;  %s1442_s19 = smov 0   ;;  %s1674_s0 = inlined_call_operand.vmem [shape: f32[2,8,3], index: 0, kind: input, shape index: {}]   ;;  %s1675_s1 = inlined_call_operand.vmem [shape: f32[2,8,4], index: 1, kind: input, shape index: {}]   ;;  %s1676_s2 = inlined_call_operand.vmem [shape: f32[2,1,64], index: 2, kind: input, shape index: {}]   ;;  %s1677_s3 = inlined_call_operand.vmem [shape: f32[2,3,64], index: 3, kind: input, shape index: {}]   ;;  %s1678_s4 = inlined_call_operand.vmem [shape: f32[2,64,4], index: 4, kind: input, shape index: {}]   ;;  %s1679_s5 = inlined_call_operand.vmem [shape: f32[2,8,16,4], index: 5, kind: output, shape index: {}]  }
   0x1   :  { %s1444_s20 = smov 0  }
   0x2 LB: > { %s27_s21 = sadd.s32 1, %s1400_s19  ;;  %p1211_p0 = scmp.ge.s32.totalorder %s1404_s20, 1  ;;  %s1404_s20 = sphi %s1444_s20, %s15_s20   ;;  %s1400_s19 = sphi %s1442_s19, %s1681_s19   ;;  %s1396_s18 = sphi %s1440_s18, %s1680_s18  }
   0x3   : > { %p29_p1 = scmp.ge.s32.totalorder %s27_s21, 2  ;;  %p246_p2 = scmp.lt.s32.totalorder %s1404_s20, 3 }
   0x5   : > { %s1683_s21 = smov (%p29_p1, %s27_s21), 0  ;;  %p247_p3 = pnand %p1211_p0, %p246_p2 }
   0x6   : > { %p300_p4 = scmp.lt.s32.totalorder (!%p247_p3), %s1396_s18, 1  ;;  %v1406_v0 = vmov (!%p247_p3), 0.0   ;;  %vm1407_vm0 = vmmov (!%p247_p3), 0   ;;  %vm357_vm1 = vcmask (!%p247_p3), 1042432   ;;  %vm350_vm2 = vcmask (!%p247_p3), 23552  }
   0x7   : > { %250 = sbr.rel (%p247_p3) target bundleno = 5120 (0x1400), region = 40  ;;  %1284 = vmatprep.subr.mxu0 (!%p247_p3), %v1406_v0  ;;  %1286 = vmatprep.mubr.msk.f32.mxu0 (!%p247_p3), %vm1407_vm0, %v1406_v0  ;;  %vm443_vm3 = vcmask (!%p247_p3), 523264   ;;  %v440_v13 = vlaneseq (!%p247_p3)  ;;  %v1408_v26 = vmov (!%p247_p3), 0  }
   0x9   : > { %v441_v14 = vand.u32 (!%p247_p3), 127, %v440_v13 }
   0xb   : > { %v1478_v15 = vcvt.s32.f32 (!%p247_p3), %v441_v14 }
   0xe   : > { %s1685_s18 = smov (!%p300_p4, %s1396_s18), 1 }
   0xf   : > { %s1214_s22 = sshll.u32 %s1685_s18, 2  ;;  %s1212_s26 = sshll.u32 %s1685_s18, 3 }
  0x10   : > { %s320_s25 = scalar_lea.vmem %s1677_s3, %s1214_s22  ;;  %s306_s29 = scalar_lea.vmem %s1674_s0, %s1212_s26 }
  0x11   : > { %v339_v1 = vld [vmem:[%s320_s25] sm:$0x7]  ;;  %s316_s7 = scalar_lea.vmem %s1676_s2, %s1685_s18  ;;  %s1256_s8 = sshll.u32 %s1685_s18, 6 }
  0x12   : > { %1285 = vmatpush3.msk.msra.mxu0 %vm357_vm1, %v339_v1  ;;  %v337_v2 = vld [vmem:[%s306_s29] sm:$0xff]  ;;  %s325_s11 = scalar_lea.vmem %s1678_s4, %s1256_s8  ;;  %s313_s14 = scalar_lea.vmem %s1675_s1, %s1212_s26 }
  0x13   : > { %1287 = vmatmul.mubr.msk.f32.vlgmr.msra.gmra.mrb[0].mxu0 %vm350_vm2, %v337_v2  ;;  %v349_v3 = vmul.f32 %v337_v2, %v337_v2  ;;  %v1221_v5 = vld [vmem:[%s316_s7] ss:$0 sm:$0xff]  ;;  %s1257_s15 = sshll.u32 %s1685_s18, 7 }
  0x14   : > { %s1622_s22 = scalar_lea.vmem %s1679_s5, %s1257_s15 }
  0x15   : > { %v351_v4 = vsel %vm350_vm2, %v349_v3, 0.0 }
  0x16   : > { %352 = vadd.xlane.f32.xlu0 %v351_v4 }
  0xa3   : > { %v353_v6 = vpop.xlane.xlu0 %352 }
  0xa4   : > { %v437_v7 = vadd.f32 %v1221_v5, %v353_v6 }
  0xe6   : > { %v427_v8 = vpop.f32.mrb[0].mxu0 }
  0xe7   : > { %v438_v9 = vmul.f32 2.0, %v427_v8  ;;  %v1288_v10 = vpop.f32.mrb[1].mxu0 }
  0xe9   : > { %v439_v11 = vsub.f32 %v437_v7, %v438_v9 }
  0xeb   : > { %v444_v12 = vsel %vm443_vm3, %v439_v11, inf }
  0xec   : > { %445 = vmin.xlane.f32.xlu0 %v444_v12 }
 0x179   : > { %v446_v16 = vpop.xlane.xlu0 %445 }
 0x17a   : > { %vm447_vm4 = vcmp.eq.f32.partialorder %v439_v11, %v446_v16 }
 0x17b   : > { %v448_v17 = vsel %vm447_vm4, %v1478_v15, 64.0 }
 0x17c   : > { %v449_v18 = vsel %vm443_vm3, %v448_v17, inf }
 0x17d   : > { %450 = vmin.xlane.f32.xlu1 %v449_v18 }
 0x20a   : > { %v451_v19 = vpop.xlane.xlu1 %450 }
 0x20b   : > { %vm452_vm5 = vcmp.eq.f32.partialorder %v1478_v15, %v451_v19 }
 0x20c   : > { %v454_v20 = vsel %vm452_vm5, 1e+30, %v439_v11  ;;  %v453_v27 = vsel %vm452_vm5, 1, %v1408_v26 }
 0x20d   : > { %v455_v21 = vsel %vm443_vm3, %v454_v20, inf }
 0x20e   : > { %456 = vmin.xlane.f32.xlu1 %v455_v21 }
 0x29b   : > { %v457_v22 = vpop.xlane.xlu1 %456 }
 0x29c   : > { %vm458_vm6 = vcmp.eq.f32.partialorder %v454_v20, %v457_v22 }
 0x29d   : > { %v459_v23 = vsel %vm458_vm6, %v1478_v15, 64.0 }
 0x29e   : > { %v460_v24 = vsel %vm443_vm3, %v459_v23, inf }
 0x29f   : > { %461 = vmin.xlane.f32.xlu0 %v460_v24 }
 0x32c   : > { %v462_v25 = vpop.xlane.xlu0 %461 }
 0x32d   : > { %vm463_vm7 = vcmp.eq.f32.partialorder %v1478_v15, %v462_v25 }
 0x32e   : > { %v464_v28 = vsel %vm463_vm7, 2, %v453_v27  ;;  %v465_v29 = vsel %vm463_vm7, 1e+30, %v454_v20 }
 0x32f   : > { %v466_v30 = vsel %vm443_vm3, %v465_v29, inf }
 0x330   : > { %467 = vmin.xlane.f32.xlu1 %v466_v30 }
 0x3bd   : > { %v468_v31 = vpop.xlane.xlu1 %467 }
 0x3be   : > { %vm469_vm8 = vcmp.eq.f32.partialorder %v465_v29, %v468_v31 }
 0x3bf   : > { %v470_v32 = vsel %vm469_vm8, %v1478_v15, 64.0 }
 0x3c0   : > { %v471_v33 = vsel %vm443_vm3, %v470_v32, inf }
 0x3c1   : > { %472 = vmin.xlane.f32.xlu0 %v471_v33 }
 0x44e   : > { %v473_v34 = vpop.xlane.xlu0 %472 }
 0x44f   : > { %vm474_vm9 = vcmp.eq.f32.partialorder %v1478_v15, %v473_v34 }
 0x450   : > { %v475_v35 = vsel %vm474_vm9, 3, %v464_v28  ;;  %v476_v36 = vsel %vm474_vm9, 1e+30, %v465_v29 }
 0x451   : > { %v477_v37 = vsel %vm443_vm3, %v476_v36, inf }
 0x452   : > { %478 = vmin.xlane.f32.xlu1 %v477_v37 }
 0x4df   : > { %v479_v38 = vpop.xlane.xlu1 %478 }
 0x4e0   : > { %vm480_vm10 = vcmp.eq.f32.partialorder %v476_v36, %v479_v38 }
 0x4e1   : > { %v481_v39 = vsel %vm480_vm10, %v1478_v15, 64.0 }
 0x4e2   : > { %v482_v40 = vsel %vm443_vm3, %v481_v39, inf }
 0x4e3   : > { %483 = vmin.xlane.f32.xlu0 %v482_v40 }
 0x570   : > { %v484_v41 = vpop.xlane.xlu0 %483 }
 0x571   : > { %vm485_vm11 = vcmp.eq.f32.partialorder %v1478_v15, %v484_v41 }
 0x572   : > { %v486_v42 = vsel %vm485_vm11, 4, %v475_v35  ;;  %v487_v43 = vsel %vm485_vm11, 1e+30, %v476_v36 }
 0x573   : > { %v488_v44 = vsel %vm443_vm3, %v487_v43, inf }
 0x574   : > { %489 = vmin.xlane.f32.xlu1 %v488_v44 }
 0x601   : > { %v490_v45 = vpop.xlane.xlu1 %489 }
 0x602   : > { %vm491_vm12 = vcmp.eq.f32.partialorder %v487_v43, %v490_v45 }
 0x603   : > { %v492_v46 = vsel %vm491_vm12, %v1478_v15, 64.0 }
 0x604   : > { %v493_v47 = vsel %vm443_vm3, %v492_v46, inf }
 0x605   : > { %494 = vmin.xlane.f32.xlu0 %v493_v47 }
 0x692   : > { %v495_v48 = vpop.xlane.xlu0 %494 }
 0x693   : > { %vm496_vm13 = vcmp.eq.f32.partialorder %v1478_v15, %v495_v48 }
 0x694   : > { %v497_v49 = vsel %vm496_vm13, 5, %v486_v42  ;;  %v498_v50 = vsel %vm496_vm13, 1e+30, %v487_v43 }
 0x695   : > { %v499_v51 = vsel %vm443_vm3, %v498_v50, inf }
 0x696   : > { %500 = vmin.xlane.f32.xlu1 %v499_v51 }
 0x723   : > { %v501_v52 = vpop.xlane.xlu1 %500 }
 0x724   : > { %vm502_vm14 = vcmp.eq.f32.partialorder %v498_v50, %v501_v52 }
 0x725   : > { %v503_v53 = vsel %vm502_vm14, %v1478_v15, 64.0 }
 0x726   : > { %v504_v54 = vsel %vm443_vm3, %v503_v53, inf }
 0x727   : > { %505 = vmin.xlane.f32.xlu0 %v504_v54 }
 0x7b4   : > { %v506_v55 = vpop.xlane.xlu0 %505 }
 0x7b5   : > { %vm507_vm15 = vcmp.eq.f32.partialorder %v1478_v15, %v506_v55 }
 0x7b6   : > { %v508_v56 = vsel %vm507_vm15, 6, %v497_v49  ;;  %v509_v57 = vsel %vm507_vm15, 1e+30, %v498_v50 }
 0x7b7   : > { %v510_v58 = vsel %vm443_vm3, %v509_v57, inf }
 0x7b8   : > { %511 = vmin.xlane.f32.xlu1 %v510_v58 }
 0x845   : > { %v512_v59 = vpop.xlane.xlu1 %511 }
 0x846   : > { %vm513_vm0 = vcmp.eq.f32.partialorder %v509_v57, %v512_v59 }
 0x847   : > { %v514_v60 = vsel %vm513_vm0, %v1478_v15, 64.0 }
 0x848   : > { %v515_v61 = vsel %vm443_vm3, %v514_v60, inf }
 0x849   : > { %516 = vmin.xlane.f32.xlu0 %v515_v61  ;;  %v341_v61 = vld [vmem:[%s325_s11] sm:$0xff] }
 0x8d6   : > { %v517_v62 = vpop.xlane.xlu0 %516 }
 0x8d7   : > { %vm518_vm1 = vcmp.eq.f32.partialorder %v1478_v15, %v517_v62  ;;  %v342_v62 = vld [vmem:[%s325_s11 + $0x8] sm:$0xff] }
 0x8d8   : > { %v519_v63 = vsel %vm518_vm1, 7, %v508_v56  ;;  %v520_v1 = vsel %vm518_vm1, 1e+30, %v509_v57 }
 0x8d9   : > { %v521_v2 = vsel %vm443_vm3, %v520_v1, inf }
 0x8da   : > { %522 = vmin.xlane.f32.xlu1 %v521_v2  ;;  %v344_v2 = vld [vmem:[%s325_s11 + $0x18] sm:$0xff] }
 0x967   : > { %v523_v3 = vpop.xlane.xlu1 %522 }
 0x968   : > { %vm524_vm2 = vcmp.eq.f32.partialorder %v520_v1, %v523_v3 }
 0x969   : > { %v525_v4 = vsel %vm524_vm2, %v1478_v15, 64.0 }
 0x96a   : > { %v526_v5 = vsel %vm443_vm3, %v525_v4, inf }
 0x96b   : > { %527 = vmin.xlane.f32.xlu0 %v526_v5 }
 0x9f8   : > { %v528_v6 = vpop.xlane.xlu0 %527 }
 0x9f9   : > { %vm529_vm4 = vcmp.eq.f32.partialorder %v1478_v15, %v528_v6 }
 0x9fa   : > { %v530_v7 = vsel %vm529_vm4, 8, %v519_v63  ;;  %v531_v8 = vsel %vm529_vm4, 1e+30, %v520_v1  ;;  %v343_v63 = vld [vmem:[%s325_s11 + $0x10] sm:$0xff]  ;;  %v1329_v1 = vpack.c.bf16 %v342_v62, %v341_v61  ;;  %v338_v61 = vld [vmem:[%s313_s14] sm:$0xff] }
 0x9fb   : > { %v532_v9 = vsel %vm443_vm3, %v531_v8, inf  ;;  %v1333_v3 = vpack.c.bf16 %v344_v2, %v343_v63 }
 0x9fc   : > { %533 = vmin.xlane.f32.xlu1 %v532_v9  ;;  %1330 = vmatprep.subr.bf16.mxu0 %v1329_v1 }
 0x9fd   : > { %1345 = vmatprep.subr.bf16.mxu1 %v1329_v1  ;;  %1332 = vmatpush3.bf16.msra.mxu0 %v1329_v1 }
 0x9fe   : > { %1349 = vmatpush3.bf16.msra.mxu1 %v1329_v1  ;;  %1334 = vmatprep.subr.bf16.mxu0 %v1333_v3  ;;  %v947_v1 = vcombine.high %v338_v61, %v338_v61 }
 0x9ff   : > { %1346 = vmatprep.subr.bf16.mxu1 %v1333_v3 }
 0xa01   : > { %1336 = vmatpush3.bf16.msra.mxu0 %v1333_v3 }
 0xa02   : > { %1350 = vmatpush3.bf16.msra.mxu1 %v1333_v3 }
 0xa89   : > { %v534_v10 = vpop.xlane.xlu1 %533 }
 0xa8a   : > { %vm535_vm5 = vcmp.eq.f32.partialorder %v531_v8, %v534_v10  ;;  %v347_v10 = vld [vmem:[%s325_s11 + $0x30] sm:$0xff] }
 0xa8b   : > { %v536_v11 = vsel %vm535_vm5, %v1478_v15, 64.0 }
 0xa8c   : > { %v537_v12 = vsel %vm443_vm3, %v536_v11, inf  ;;  %v348_v11 = vld [vmem:[%s325_s11 + $0x38] sm:$0xff] }
 0xa8d   : > { %538 = vmin.xlane.f32.xlu0 %v537_v12  ;;  %v1341_v12 = vpack.c.bf16 %v348_v11, %v347_v10 }
 0xb1a   : > { %v539_v14 = vpop.xlane.xlu0 %538 }
 0xb1b   : > { %vm540_vm6 = vcmp.eq.f32.partialorder %v1478_v15, %v539_v14  ;;  %v1409_v14 = vmov 1966171168  }
 0xb1c   : > { %v541_v16 = vsel %vm540_vm6, 9, %v530_v7  ;;  %v542_v17 = vsel %vm540_vm6, 1e+30, %v531_v8  ;;  %v345_v7 = vld [vmem:[%s325_s11 + $0x20] sm:$0xff]  ;;  %v346_v8 = vld [vmem:[%s325_s11 + $0x28] sm:$0xff] }
 0xb1d   : > { %v543_v18 = vsel %vm443_vm3, %v542_v17, inf  ;;  %v1337_v9 = vpack.c.bf16 %v346_v8, %v345_v7 }
 0xb1e   : > { %544 = vmin.xlane.f32.xlu1 %v543_v18 }
 0xb1f   : > { %1338 = vmatprep.subr.bf16.mxu0 %v1337_v9  ;;  %1347 = vmatprep.subr.bf16.mxu1 %v1337_v9 }
 0xb20   : > { %1340 = vmatpush3.bf16.msra.mxu0 %v1337_v9  ;;  %1351 = vmatpush3.bf16.msra.mxu1 %v1337_v9 }
 0xb21   : > { %1342 = vmatprep.subr.bf16.mxu0 %v1341_v12  ;;  %1348 = vmatprep.subr.bf16.mxu1 %v1341_v12 }
 0xb24   : > { %1344 = vmatpush3.bf16.msra.mxu0 %v1341_v12  ;;  %1352 = vmatpush3.bf16.msra.mxu1 %v1341_v12 }
 0xbab   : > { %v545_v19 = vpop.xlane.xlu1 %544 }
 0xbac   : > { %vm546_vm7 = vcmp.eq.f32.partialorder %v542_v17, %v545_v19 }
 0xbad   : > { %v547_v20 = vsel %vm546_vm7, %v1478_v15, 64.0 }
 0xbae   : > { %v548_v21 = vsel %vm443_vm3, %v547_v20, inf }
 0xbaf   : > { %549 = vmin.xlane.f32.xlu0 %v548_v21 }
 0xc3c   : > { %v550_v22 = vpop.xlane.xlu0 %549 }
 0xc3d   : > { %vm551_vm8 = vcmp.eq.f32.partialorder %v1478_v15, %v550_v22 }
 0xc3e   : > { %v552_v23 = vsel %vm551_vm8, 10, %v541_v16  ;;  %v553_v24 = vsel %vm551_vm8, 1e+30, %v542_v17  ;;  %v626_v16 = vunpack.c.l.s4 %v1409_v14  ;;  %v620_v17 = vshrl.u32 %v440_v13, 7 }
 0xc3f   : > { %v554_v25 = vsel %vm443_vm3, %v553_v24, inf }
 0xc40   : > { %555 = vmin.xlane.f32.xlu1 %v554_v25  ;;  %v627_v18 = vunpack.c.0.s8 %v626_v16  ;;  %v621_v22 = vadd.s32 8, %v620_v17  ;;  %v1551_v25 = vsub.s32 0, %v620_v17 }
 0xc42   : > { %v1547_v19 = vsub.s32 %v627_v18, %v620_v17  ;;  %v1555_v13 = vadd.s32 1, %v621_v22 }
 0xc44   : > { %v954_v62 = vrot.slane %v338_v61, %v1547_v19 }
 0xc46   : > { %v962_v63 = vcombine.high %v954_v62, %v954_v62  ;;  %v970_v3 = vrot.slane %v954_v62, %v1547_v19 }
 0xc48   : > { %v984_v2 = vrot.slane %v962_v63, %v1547_v19  ;;  %v992_v14 = vcombine.high %v970_v3, %v970_v3 }
 0xc4a   : > { %v1003_v12 = vrot.slane %v984_v2, %v1551_v25 }
 0xccd   : > { %v556_v26 = vpop.xlane.xlu1 %555 }
 0xcce   : > { %vm557_vm9 = vcmp.eq.f32.partialorder %v553_v24, %v556_v26 }
 0xccf   : > { %v558_v27 = vsel %vm557_vm9, %v1478_v15, 64.0 }
 0xcd0   : > { %v559_v28 = vsel %vm443_vm3, %v558_v27, inf }
 0xcd1   : > { %560 = vmin.xlane.f32.xlu0 %v559_v28 }
 0xd5e   : > { %v561_v29 = vpop.xlane.xlu0 %560 }
 0xd5f   : > { %vm562_vm10 = vcmp.eq.f32.partialorder %v1478_v15, %v561_v29  ;;  %v622_v29 = vadd.s32 1, %v620_v17 }
 0xd60   : > { %v563_v30 = vsel %vm562_vm10, 11, %v552_v23  ;;  %v564_v31 = vsel %vm562_vm10, 1e+30, %v553_v24 }
 0xd61   : > { %v565_v32 = vsel %vm443_vm3, %v564_v31, inf }
 0xd62   : > { %566 = vmin.xlane.f32.xlu1 %v565_v32 }
 0xdef   : > { %v567_v33 = vpop.xlane.xlu1 %566 }
 0xdf0   : > { %vm568_vm11 = vcmp.eq.f32.partialorder %v564_v31, %v567_v33 }
 0xdf1   : > { %v569_v34 = vsel %vm568_vm11, %v1478_v15, 64.0 }
 0xdf2   : > { %v570_v35 = vsel %vm443_vm3, %v569_v34, inf }
 0xdf3   : > { %571 = vmin.xlane.f32.xlu0 %v570_v35 }
 0xe80   : > { %v572_v36 = vpop.xlane.xlu0 %571 }
 0xe81   : > { %vm573_vm12 = vcmp.eq.f32.partialorder %v1478_v15, %v572_v36 }
 0xe82   : > { %v574_v37 = vsel %vm573_vm12, 12, %v563_v30  ;;  %v575_v38 = vsel %vm573_vm12, 1e+30, %v564_v31 }
 0xe83   : > { %v576_v39 = vsel %vm443_vm3, %v575_v38, inf }
 0xe84   : > { %577 = vmin.xlane.f32.xlu1 %v576_v39 }
 0xf11   : > { %v578_v40 = vpop.xlane.xlu1 %577 }
 0xf12   : > { %vm579_vm13 = vcmp.eq.f32.partialorder %v575_v38, %v578_v40 }
 0xf13   : > { %v580_v41 = vsel %vm579_vm13, %v1478_v15, 64.0 }
 0xf14   : > { %v581_v42 = vsel %vm443_vm3, %v580_v41, inf }
 0xf15   : > { %582 = vmin.xlane.f32.xlu0 %v581_v42 }
 0xfa2   : > { %v583_v43 = vpop.xlane.xlu0 %582 }
 0xfa3   : > { %vm584_vm14 = vcmp.eq.f32.partialorder %v1478_v15, %v583_v43 }
 0xfa4   : > { %v585_v44 = vsel %vm584_vm14, 13, %v574_v37  ;;  %v586_v45 = vsel %vm584_vm14, 1e+30, %v575_v38 }
 0xfa5   : > { %v587_v46 = vsel %vm443_vm3, %v586_v45, inf }
 0xfa6   : > { %588 = vmin.xlane.f32.xlu1 %v587_v46 }
0x1033   : > { %v589_v47 = vpop.xlane.xlu1 %588 }
0x1034   : > { %vm590_vm15 = vcmp.eq.f32.partialorder %v586_v45, %v589_v47 }
0x1035   : > { %v591_v48 = vsel %vm590_vm15, %v1478_v15, 64.0 }
0x1036   : > { %v592_v49 = vsel %vm443_vm3, %v591_v48, inf }
0x1037   : > { %593 = vmin.xlane.f32.xlu0 %v592_v49 }
0x10c4   : > { %v594_v50 = vpop.xlane.xlu0 %593 }
0x10c5   : > { %vm595_vm0 = vcmp.eq.f32.partialorder %v1478_v15, %v594_v50 }
0x10c6   : > { %v596_v51 = vsel %vm595_vm0, 14, %v585_v44  ;;  %v597_v52 = vsel %vm595_vm0, 1e+30, %v586_v45 }
0x10c7   : > { %v598_v53 = vsel %vm443_vm3, %v597_v52, inf }
0x10c8   : > { %599 = vmin.xlane.f32.xlu1 %v598_v53 }
0x1155   : > { %v600_v54 = vpop.xlane.xlu1 %599 }
0x1156   : > { %vm601_vm1 = vcmp.eq.f32.partialorder %v597_v52, %v600_v54 }
0x1157   : > { %v602_v55 = vsel %vm601_vm1, %v1478_v15, 64.0 }
0x1158   : > { %v603_v56 = vsel %vm443_vm3, %v602_v55, inf }
0x1159   : > { %604 = vmin.xlane.f32.xlu0 %v603_v56 }
0x11e6   : > { %v605_v57 = vpop.xlane.xlu0 %604 }
0x11e7   : > { %vm606_vm2 = vcmp.eq.f32.partialorder %v1478_v15, %v605_v57 }
0x11e8   : > { %v607_v58 = vsel %vm606_vm2, 15, %v596_v51  ;;  %v608_v59 = vsel %vm606_vm2, 1e+30, %v597_v52 }
0x11e9   : > { %v609_v60 = vsel %vm443_vm3, %v608_v59, inf }
0x11ea   : > { %610 = vmin.xlane.f32.xlu1 %v609_v60 }
0x1277   : > { %v611_v4 = vpop.xlane.xlu1 %610 }
0x1278   : > { %vm612_vm4 = vcmp.eq.f32.partialorder %v608_v59, %v611_v4  ;;  %v994_v4 = vcombine.high %v984_v2, %v984_v2 }
0x1279   : > { %v613_v5 = vsel %vm612_vm4, %v1478_v15, 64.0 }
0x127a   : > { %v614_v6 = vsel %vm443_vm3, %v613_v5, inf  ;;  %v961_v5 = vrot.slane %v947_v1, %v1547_v19  ;;  %v1011_v7 = vrot.slane %v994_v4, %v1551_v25 }
0x127b   : > { %615 = vmin.xlane.f32.xlu0 %v614_v6 }
0x127c   : > { %v977_v8 = vrot.slane %v961_v5, %v1547_v19  ;;  %v963_v9 = vcombine.high %v961_v5, %v961_v5 }
0x127e   : > { %v1015_v22 = vrot.slane %v977_v8, %v1551_v25 }
0x1308   : > { %v616_v20 = vpop.xlane.xlu0 %615 }
0x1309   : > { %vm617_vm5 = vcmp.eq.f32.partialorder %v1478_v15, %v616_v20 }
0x130a   : > { %v618_v21 = vsel %vm617_vm5, 16, %v607_v58 }
0x130b   : > { %v624_v23 = vcombine.high %v618_v21, %v618_v21  ;;  %v631_v24 = vrot.slane %v618_v21, %v1547_v19 }
0x130d   : > { %v638_v26 = vrot.slane %v624_v23, %v1547_v19  ;;  %v639_v27 = vcombine.high %v631_v24, %v631_v24  ;;  %v647_v28 = vrot.slane %v631_v24, %v1547_v19  ;;  %v991_v23 = vrot.slane %v963_v9, %v1547_v19 }
0x130f   : > { %v640_v30 = vcombine.high %v638_v26, %v638_v26  ;;  %v654_v31 = vrot.slane %v638_v26, %v1547_v19  ;;  %v661_v15 = vrot.slane %v639_v27, %v1547_v19  ;;  %v669_v32 = vcombine.high %v647_v28, %v647_v28 }
0x1310   : > { %v676_v33 = vrot.slane %v647_v28, %v1551_v25  ;;  %v1007_v28 = vrot.slane %v992_v14, %v1551_v25 }
0x1311   : > { %v680_v34 = vrot.slane %v661_v15, %v1551_v25  ;;  %v671_v35 = vcombine.high %v661_v15, %v661_v15  ;;  %v692_v36 = vrot.slane %v654_v31, %v1551_v25  ;;  %v684_v37 = vrot.slane %v669_v32, %v1551_v25 }
0x1312   : > { %vm705_vm6 = vcmp.eq.s32.totalorder %v676_v33, %v622_v29  ;;  %vm706_vm7 = vcmp.eq.s32.totalorder %v676_v33, %v1555_v13  ;;  %v668_v38 = vrot.slane %v640_v30, %v1547_v19  ;;  %v670_v43 = vcombine.high %v654_v31, %v654_v31 }
0x1313   : > { %v1222_v39 = vsel %vm705_vm6, 1.0, %v1406_v0  ;;  %v1223_v40 = vsel %vm706_vm7, 1.0, %v1406_v0  ;;  %vm707_vm8 = vcmp.eq.s32.totalorder %v680_v34, %v622_v29  ;;  %v688_v41 = vrot.slane %v671_v35, %v1551_v25 }
0x1314   : > { %1305 = vmatprep.mubr.msk.f32.mxu0 %vm443_vm3, %v1222_v39  ;;  %v1224_v42 = vsel %vm707_vm8, 1.0, %v1406_v0  ;;  %vm708_vm10 = vcmp.eq.s32.totalorder %v680_v34, %v1555_v13  ;;  %vm713_vm12 = vcmp.eq.s32.totalorder %v692_v36, %v622_v29  ;;  %vm709_vm13 = vcmp.eq.s32.totalorder %v684_v37, %v622_v29 }
0x1315   : > { %1306 = vmatmul.mubr.msk.f32.vlgmr.msra.gmra.mrb[2].mxu0 %vm443_vm3, %v1223_v40  ;;  %vm711_vm9 = vcmp.eq.s32.totalorder %v688_v41, %v622_v29  ;;  %vm712_vm11 = vcmp.eq.s32.totalorder %v688_v41, %v1555_v13  ;;  %v696_v46 = vrot.slane %v668_v38, %v1551_v25  ;;  %v1225_v47 = vsel %vm708_vm10, 1.0, %v1406_v0 }
0x1316   : > { %1308 = vmatprep.mubr.msk.f32.mxu0 %vm443_vm3, %v1224_v42  ;;  %v1228_v44 = vsel %vm711_vm9, 1.0, %v1406_v0  ;;  %v1229_v45 = vsel %vm712_vm11, 1.0, %v1406_v0  ;;  %v1230_v48 = vsel %vm713_vm12, 1.0, %v1406_v0  ;;  %vm710_vm14 = vcmp.eq.s32.totalorder %v684_v37, %v1555_v13 }
0x1317   : > { %1314 = vmatprep.mubr.msk.f32.mxu1 %vm443_vm3, %v1228_v44  ;;  %vm714_vm15 = vcmp.eq.s32.totalorder %v692_v36, %v1555_v13  ;;  %v1226_v49 = vsel %vm709_vm13, 1.0, %v1406_v0  ;;  %vm715_vm0 = vcmp.eq.s32.totalorder %v696_v46, %v622_v29  ;;  %v700_v50 = vrot.slane %v670_v43, %v1551_v25 }
0x1318   : > { %1315 = vmatmul.mubr.msk.f32.vlgmr.msra.gmra.mrb[0].mxu1 %vm443_vm3, %v1229_v45  ;;  %v672_v51 = vcombine.high %v668_v38, %v668_v38  ;;  %v1231_v52 = vsel %vm714_vm15, 1.0, %v1406_v0  ;;  %v1227_v53 = vsel %vm710_vm14, 1.0, %v1406_v0  ;;  %v1232_v54 = vsel %vm715_vm0, 1.0, %v1406_v0 }
0x1319   : > { %1309 = vmatmul.mubr.msk.f32.gmra.mrb[4].mxu0 %vm443_vm3, %v1225_v47  ;;  %1317 = vmatprep.mubr.msk.f32.mxu1 %vm443_vm3, %v1230_v48  ;;  %vm716_vm1 = vcmp.eq.s32.totalorder %v696_v46, %v1555_v13  ;;  %vm717_vm2 = vcmp.eq.s32.totalorder %v700_v50, %v622_v29  ;;  %vm718_vm4 = vcmp.eq.s32.totalorder %v700_v50, %v1555_v13 }
0x131a   : > { %1311 = vmatprep.mubr.msk.f32.mxu0 %vm443_vm3, %v1226_v49  ;;  %v704_v55 = vrot.slane %v672_v51, %v1551_v25  ;;  %v1233_v56 = vsel %vm716_vm1, 1.0, %v1406_v0  ;;  %v1234_v57 = vsel %vm717_vm2, 1.0, %v1406_v0  ;;  %v1235_v58 = vsel %vm718_vm4, 1.0, %v1406_v0 }
0x131b   : > { %v1019_v15 = vrot.slane %v991_v23, %v1551_v25  ;;  %v993_v32 = vcombine.high %v977_v8, %v977_v8  ;;  %v995_v41 = vcombine.high %v991_v23, %v991_v23 }
0x131c   : > { %1318 = vmatmul.mubr.msk.f32.gmra.mrb[2].mxu1 %vm443_vm3, %v1231_v52  ;;  %vm719_vm5 = vcmp.eq.s32.totalorder %v704_v55, %v622_v29  ;;  %vm720_vm6 = vcmp.eq.s32.totalorder %v704_v55, %v1555_v13 }
0x131d   : > { %1312 = vmatmul.mubr.msk.f32.gmra.mrb[6].mxu0 %vm443_vm3, %v1227_v53  ;;  %1320 = vmatprep.mubr.msk.f32.mxu1 %vm443_vm3, %v1232_v54  ;;  %v1236_v59 = vsel %vm719_vm5, 1.0, %v1406_v0  ;;  %v1237_v60 = vsel %vm720_vm6, 1.0, %v1406_v0  ;;  %v999_v0 = vrot.slane %v970_v3, %v1551_v25  ;;  %v1023_v40 = vrot.slane %v993_v32, %v1551_v25 }
0x131e   : > { %v1027_v46 = vrot.slane %v995_v41, %v1551_v25 }
0x1320   : > { %1321 = vmatmul.mubr.msk.f32.gmra.mrb[4].mxu1 %vm443_vm3, %v1233_v56 }
0x1321   : > { %1323 = vmatprep.mubr.msk.f32.mxu1 %vm443_vm3, %v1234_v57 }
0x1324   : > { %1324 = vmatmul.mubr.msk.f32.gmra.mrb[6].mxu1 %vm443_vm3, %v1235_v58 }
0x1325   : > { %1326 = vmatprep.mubr.msk.f32.mxu1 %vm443_vm3, %v1236_v59 }
0x1328   : > { %1327 = vmatmul.mubr.msk.f32.gmra.mrb[8].mxu1 %vm443_vm3, %v1237_v60  ;;  %vm1052_vm3 = vcmask 31744  }
0x13e8   : > { %v1307_v6 = vpop.f32.mrb[2].mxu0 }
0x13e9   : > { %v1037_v10 = vsub.f32 %v1307_v6, %v999_v0  ;;  %v867_v11 = vpop.f32.mrb[3].mxu0 }
0x13ea   : > { %v1036_v16 = vsub.f32 %v867_v11, %v999_v0 }
0x13eb   : > { %1054 = vst.msk [vmem:[%s1622_s22 + $0x8] sm:$0xff] %vm1052_vm3, %v1037_v10  ;;  %v1316_v17 = vpop.f32.mrb[0].mxu1 }
0x13ec   : > { %1053 = vst.msk [vmem:[%s1622_s22] sm:$0xff] %vm1052_vm3, %v1036_v16  ;;  %v1310_v18 = vpop.f32.mrb[4].mxu0  ;;  %v1043_v20 = vsub.f32 %v1316_v17, %v1011_v7  ;;  %v897_v21 = vpop.f32.mrb[1].mxu1 }
0x13ed   : > { %v1039_v24 = vsub.f32 %v1310_v18, %v1003_v12  ;;  %v877_v26 = vpop.f32.mrb[5].mxu0  ;;  %v1042_v27 = vsub.f32 %v897_v21, %v1011_v7 }
0x13ee   : > { %1060 = vst.msk [vmem:[%s1622_s22 + $0x38] sm:$0xff] %vm1052_vm3, %v1043_v20  ;;  %v1038_v29 = vsub.f32 %v877_v26, %v1003_v12 }
0x13ef   : > { %1056 = vst.msk [vmem:[%s1622_s22 + $0x18] sm:$0xff] %vm1052_vm3, %v1039_v24  ;;  %1059 = vst.msk [vmem:[%s1622_s22 + $0x30] sm:$0xff] %vm1052_vm3, %v1042_v27  ;;  %v1319_v13 = vpop.f32.mrb[2].mxu1 }
0x13f0   : > { %1055 = vst.msk [vmem:[%s1622_s22 + $0x10] sm:$0xff] %vm1052_vm3, %v1038_v29  ;;  %v1313_v19 = vpop.f32.mrb[6].mxu0  ;;  %v1045_v30 = vsub.f32 %v1319_v13, %v1015_v22  ;;  %v907_v31 = vpop.f32.mrb[3].mxu1 }
0x13f1   : > { %v1041_v33 = vsub.f32 %v1313_v19, %v1007_v28  ;;  %v887_v34 = vpop.f32.mrb[7].mxu0  ;;  %v1044_v35 = vsub.f32 %v907_v31, %v1015_v22 }
0x13f2   : > { %1062 = vst.msk [vmem:[%s1622_s22 + $0x48] sm:$0xff] %vm1052_vm3, %v1045_v30  ;;  %v1040_v36 = vsub.f32 %v887_v34, %v1007_v28 }
0x13f3   : > { %1058 = vst.msk [vmem:[%s1622_s22 + $0x28] sm:$0xff] %vm1052_vm3, %v1041_v33  ;;  %1061 = vst.msk [vmem:[%s1622_s22 + $0x40] sm:$0xff] %vm1052_vm3, %v1044_v35  ;;  %v1322_v37 = vpop.f32.mrb[4].mxu1 }
0x13f4   : > { %1057 = vst.msk [vmem:[%s1622_s22 + $0x20] sm:$0xff] %vm1052_vm3, %v1040_v36  ;;  %v1047_v38 = vsub.f32 %v1322_v37, %v1019_v15  ;;  %v917_v39 = vpop.f32.mrb[5].mxu1 }
0x13f5   : > { %v1046_v42 = vsub.f32 %v917_v39, %v1019_v15 }
0x13f6   : > { %1064 = vst.msk [vmem:[%s1622_s22 + $0x58] sm:$0xff] %vm1052_vm3, %v1047_v38 }
0x13f7   : > { %1063 = vst.msk [vmem:[%s1622_s22 + $0x50] sm:$0xff] %vm1052_vm3, %v1046_v42  ;;  %v1325_v43 = vpop.f32.mrb[6].mxu1 }
0x13f8   : > { %v1049_v44 = vsub.f32 %v1325_v43, %v1023_v40  ;;  %v927_v45 = vpop.f32.mrb[7].mxu1 }
0x13f9   : > { %v1048_v47 = vsub.f32 %v927_v45, %v1023_v40 }
0x13fa   : > { %1066 = vst.msk [vmem:[%s1622_s22 + $0x68] sm:$0xff] %vm1052_vm3, %v1049_v44 }
0x13fb   : > { %1065 = vst.msk [vmem:[%s1622_s22 + $0x60] sm:$0xff] %vm1052_vm3, %v1048_v47  ;;  %v1328_v48 = vpop.f32.mrb[8].mxu1 }
0x13fc   : > { %v1051_v49 = vsub.f32 %v1328_v48, %v1027_v46  ;;  %v937_v50 = vpop.f32.mrb[9].mxu1 }
0x13fd   : > { %v1050_v51 = vsub.f32 %v937_v50, %v1027_v46 }
0x13fe   : > { %1068 = vst.msk [vmem:[%s1622_s22 + $0x78] sm:$0xff] %vm1052_vm3, %v1051_v49 }
0x13ff   : > { %1067 = vst.msk [vmem:[%s1622_s22 + $0x70] sm:$0xff] %vm1052_vm3, %v1050_v51 }
0x1400 PF: > { %s15_s20 = sadd.s32 1, %s1404_s20   ;;  %s1680_s18 = smov %s1400_s19 }
0x1401   : > { %p12_p5 = scmp.ge.s32.totalorder %s15_s20, 4   ;;  %s1681_s19 = smov %s1683_s21 }
0x1403   :  { %14 = sbr.rel (!%p12_p5) target bundleno = 2 (0x2), region = 82 }

</bundles_post_ra>
